<compile_context>
chip_gen: v5e
topology: v5e:2x2
jax: 0.10.0
libtpu: 0.0.40
codegen_flags: <defaults>
</compile_context>

<pallas_src>
import functools

import jax
import jax.numpy as jnp
from jax.experimental import pallas as pl
from jax.experimental.pallas import tpu as pltpu


def _attention_kernel(x_ref, gnw_ref, gnb_ref, wqkv_ref, wproj_ref, bproj_ref,
                      o_ref, xn_scr, k_scr, v1_scr, qt_scr, *, num_groups, eps):
    # x_ref:   (1, C, N) f32   full image, channel-major (resident across query tiles)
    # gnw/gnb: (C, 1)    f32   GroupNorm affine (column form, broadcasts over N)
    # wqkv:    (3C, C)   bf16  fused qkv weight; C^-0.5 pre-folded into the q rows
    # wproj:   (C, C)    bf16  output projection weight
    # bproj:   (C, 1)    f32   output projection bias
    # o_ref:   (1, C, tq)      output tile (channel-major, lane-dense)
    # xn_scr:  (C, N)    f32   normalized input (GroupNorm affine folded in)
    # k_scr:   (C, N)    bf16  keys
    # v1_scr:  (C+2, N)  bf16  values + two "ones" rows (softmax denom via MXU)
    # qt_scr:  (N, C)    bf16  queries, token-major (transposed once per image)
    C = x_ref.shape[1]
    N = x_ref.shape[2]
    tq = o_ref.shape[2]
    cpg = C // num_groups
    inv_cnt = 1.0 / float(cpg * N)
    j = pl.program_id(1)

    # ---- once per image (first query tile): GroupNorm + fused qkv ----
    @pl.when(j == 0)
    def _prep():
        x = x_ref[0]                                           # (C, N) f32
        # TODO(synk): for num_groups ~ 32, replace the unrolled loop with one
        # batched (G, cpg*N) reduction to avoid bundle bloat in the prologue.
        for g in range(num_groups):                            # static unroll
            lo, hi = g * cpg, (g + 1) * cpg
            xg = x[lo:hi, :]                                   # (cpg, N)
            mean = jnp.sum(xg, keepdims=True) * inv_cnt        # (1, 1)
            ex2 = jnp.sum(xg * xg, keepdims=True) * inv_cnt    # (1, 1)
            r = jax.lax.rsqrt(ex2 - mean * mean + eps)
            a = gnw_ref[lo:hi, :] * r                          # (cpg, 1) folded scale
            sh = gnb_ref[lo:hi, :] - mean * a                  # (cpg, 1) folded shift
            xn_scr[lo:hi, :] = xg * a + sh

        # Fused qkv projection: one (3C, C) @ (C, N) MXU pass, bf16 operands.
        qkv = jnp.dot(wqkv_ref[...], xn_scr[...].astype(jnp.bfloat16),
                      preferred_element_type=jnp.float32)      # (3C, N) f32
        # q goes token-major once per image (in-VMEM transpose; XLU is idle).
        qt_scr[...] = jnp.transpose(qkv[0:C, :]).astype(jnp.bfloat16)
        k_scr[...] = qkv[C:2 * C, :].astype(jnp.bfloat16)
        v1_scr[0:C, :] = qkv[2 * C:3 * C, :].astype(jnp.bfloat16)
        # Two ones-rows (one packed bf16 sublane): V@P^T then also yields the
        # softmax row-sums "for free" on the MXU.
        v1_scr[C:C + 2, :] = jnp.ones((2, N), jnp.bfloat16)

    # ---- per query tile: scores, softmax (deferred norm), V @ P^T, proj ----
    start = pl.multiple_of(j * tq, tq)
    q_t = qt_scr[pl.ds(start, tq), :]                          # (tq, C) bf16
    s = jnp.dot(q_t, k_scr[...],
                preferred_element_type=jnp.float32)            # (tq, N) f32
    p = jnp.exp(s - jnp.max(s, axis=-1, keepdims=True))        # unnormalized probs
    oa = jax.lax.dot_general(v1_scr[...], p.astype(jnp.bfloat16),
                             (((1,), (1,)), ((), ())),
                             preferred_element_type=jnp.float32)   # (C+2, tq) f32
    inv = pl.reciprocal(oa[C:C + 1, :], approx=True)           # (1, tq) 1/rowsum
    out_cn = oa[0:C, :] * inv                                  # (C, tq) normalized
    y = jnp.dot(wproj_ref[...], out_cn.astype(jnp.bfloat16),
                preferred_element_type=jnp.float32) + bproj_ref[...]   # (C, tq)
    o_ref[0] = (y + x_ref[0, :, pl.ds(start, tq)]).astype(o_ref.dtype)


def attention_forward(x, gn_weight, gn_bias, qkv_weight, proj_weight,
                      proj_bias, *, num_groups, eps=1e-5):
    """x: (B, C, H, W) f32; qkv_weight: (3C, C, 1, 1); proj_weight: (C, C, 1, 1);
    proj_bias: (C,); gn_weight/gn_bias: (C,)."""
    B, C, H, W = x.shape
    N = H * W
    assert C % num_groups == 0

    # Query tile size: lane-dense multiple of 128 when possible.
    if N % 256 == 0 and N > 256:
        tq = 256
    elif N % 128 == 0:
        tq = 128
    else:
        tq = N            # small / ragged spatial sizes: single query tile
    nq = N // tq

    x_cn = x.reshape(B, C, N)                    # flattened NCHW (pure view)

    # Weight prep (host side): fold attention scale into the q rows; bf16 MXU
    # operands with f32 accumulation in-kernel.
    wqkv = qkv_weight.reshape(3 * C, C).astype(jnp.float32)
    wqkv = wqkv.at[:C, :].multiply(float(C) ** -0.5).astype(jnp.bfloat16)
    wproj = proj_weight.reshape(C, C).astype(jnp.bfloat16)
    bproj = proj_bias.reshape(C, 1).astype(jnp.float32)
    gnw = gn_weight.reshape(C, 1).astype(jnp.float32)
    gnb = gn_bias.reshape(C, 1).astype(jnp.float32)

    kernel = functools.partial(_attention_kernel, num_groups=num_groups,
                               eps=eps)

    # Scoped-VMEM limit sized to the real working set (raises v5e's 16 MiB
    # default when needed; never below the 32 MiB v6e/v7x default).
    est = (2 * C * N * 4                    # double-buffered x block
           + 2 * C * tq * 4                 # double-buffered out block
           + C * N * 4                      # xn scratch (f32)
           + (2 * C + 2 + C) * N * 2        # k / v1 / q^T scratches (bf16)
           + 3 * tq * N * 4                 # score / prob temporaries
           + 8 * C * C * 2)                 # weights
    vmem_limit = int(min(64 * 1024 * 1024, max(32 * 1024 * 1024, 2 * est)))

    out = pl.pallas_call(
        kernel,
        out_shape=jax.ShapeDtypeStruct((B, C, N), x.dtype),
        grid=(B, nq),
        in_specs=[
            pl.BlockSpec((1, C, N), lambda b, j: (b, 0, 0)),   # x (resident per b)
            pl.BlockSpec((C, 1), lambda b, j: (0, 0)),         # gn weight
            pl.BlockSpec((C, 1), lambda b, j: (0, 0)),         # gn bias
            pl.BlockSpec((3 * C, C), lambda b, j: (0, 0)),     # fused qkv weight
            pl.BlockSpec((C, C), lambda b, j: (0, 0)),         # proj weight
            pl.BlockSpec((C, 1), lambda b, j: (0, 0)),         # proj bias
        ],
        out_specs=pl.BlockSpec((1, C, tq), lambda b, j: (b, 0, j)),
        scratch_shapes=[
            pltpu.VMEM((C, N), jnp.float32),        # normalized x
            pltpu.VMEM((C, N), jnp.bfloat16),       # K
            pltpu.VMEM((C + 2, N), jnp.bfloat16),   # V + ones rows
            pltpu.VMEM((N, C), jnp.bfloat16),       # Q^T (token-major)
        ],
        compiler_params=pltpu.CompilerParams(
            dimension_semantics=("parallel", "arbitrary"),
            vmem_limit_bytes=vmem_limit),
    )(x_cn, gnw, gnb, wqkv, wproj, bproj)

    return out.reshape(B, C, H, W)


def _reference(x, gn_w, gn_b, qkv_w, proj_w, proj_b, *, num_groups, eps=1e-5):
    """Pure-JAX f32 reference mirroring the PyTorch forward (for validation)."""
    B, C, H, W = x.shape
    G = num_groups
    xg = x.reshape(B, G, C // G, H, W)
    mean = jnp.mean(xg, axis=(2, 3, 4), keepdims=True)
    var = jnp.mean((xg - mean) ** 2, axis=(2, 3, 4), keepdims=True)
    xn = ((xg - mean) / jnp.sqrt(var + eps)).reshape(B, C, H, W)
    xn = xn * gn_w[None, :, None, None] + gn_b[None, :, None, None]

    hp = jax.lax.Precision.HIGHEST
    wqkv = qkv_w.reshape(3 * C, C)
    qkv = jnp.einsum("oc,bchw->bohw", wqkv, xn, precision=hp)
    q, k, v = jnp.split(qkv, 3, axis=1)
    n = H * W
    q = q.reshape(B, C, n).transpose(0, 2, 1)            # (B, n, C)
    k = k.reshape(B, C, n)                                # (B, C, n)
    v = v.reshape(B, C, n).transpose(0, 2, 1)             # (B, n, C)
    attn = jnp.einsum("bnc,bcm->bnm", q * (C ** -0.5), k, precision=hp)
    attn = jax.nn.softmax(attn, axis=-1)
    out = jnp.einsum("bnm,bmc->bnc", attn, v, precision=hp)
    out = out.transpose(0, 2, 1).reshape(B, C, H, W)
    y = jnp.einsum("oc,bchw->bohw", proj_w.reshape(C, C), out, precision=hp)
    y = y + proj_b[None, :, None, None]
    return y + x


if __name__ == "__main__":
    B, C, H, W = 2, 32, 16, 16
    NUM_GROUPS = 4   # GroupNorm(4, 32): cpg = 8 keeps group slices sublane-aligned

    key = jax.random.PRNGKey(0)
    kx, kq, kp, kpb, kgw, kgb = jax.random.split(key, 6)

    x = jax.random.normal(kx, (B, C, H, W), dtype=jnp.float32)

    # PyTorch-style Conv2d(C, ., 1) uniform init bound (fan_in = C).
    bound = 1.0 / (C ** 0.5)
    qkv_w = jax.random.uniform(kq, (3 * C, C, 1, 1), jnp.float32, -bound, bound)
    proj_w = jax.random.uniform(kp, (C, C, 1, 1), jnp.float32, -bound, bound)
    proj_b = jax.random.uniform(kpb, (C,), jnp.float32, -bound, bound)
    # GroupNorm affine (PyTorch inits to ones/zeros; perturb to exercise path).
    gn_w = 1.0 + 0.1 * jax.random.normal(kgw, (C,), jnp.float32)
    gn_b = 0.1 * jax.random.normal(kgb, (C,), jnp.float32)

    out = attention_forward(x, gn_w, gn_b, qkv_w, proj_w, proj_b,
                            num_groups=NUM_GROUPS)
    out = jax.block_until_ready(out)
    assert out.shape == (B, C, H, W), out.shape

    ref = _reference(x, gn_w, gn_b, qkv_w, proj_w, proj_b,
                     num_groups=NUM_GROUPS)
    max_err = float(jnp.max(jnp.abs(out - ref)))
    # bf16 MXU operands + approx reciprocal => tolerance looser than pure f32.
    assert jnp.allclose(out, ref, atol=5e-2, rtol=5e-2), max_err

    print("KERNEL_OK")
</pallas_src>

<mosaic_0001>
module attributes {stable_mosaic.version = 11 : i64} {
  func.func @_attention_kernel(%arg0: i32, %arg1: i32, %arg2: memref<1x32x256xf32, #tpu.memory_space<vmem>>, %arg3: memref<32x1xf32, #tpu.memory_space<vmem>>, %arg4: memref<32x1xf32, #tpu.memory_space<vmem>>, %arg5: memref<96x32xbf16, #tpu.memory_space<vmem>>, %arg6: memref<32x32xbf16, #tpu.memory_space<vmem>>, %arg7: memref<32x1xf32, #tpu.memory_space<vmem>>, %arg8: memref<1x32x128xf32, #tpu.memory_space<vmem>>, %arg9: memref<32x256xf32, #tpu.memory_space<vmem>>, %arg10: memref<32x256xbf16, #tpu.memory_space<vmem>>, %arg11: memref<34x256xbf16, #tpu.memory_space<vmem>>, %arg12: memref<256x32xbf16, #tpu.memory_space<vmem>>) attributes {dimension_semantics = [#tpu.dimension_semantics<parallel>, #tpu.dimension_semantics<arbitrary>], iteration_bounds = array<i64: 2, 2>, scalar_prefetch = 0 : i64, scratch_operands = 4 : i64, tpu.core_type = #tpu.core_type<tc>, window_params = [{transform_indices = @transform_0, window_bounds = array<i64: 1, 32, 256>}, {pipeline_mode = #tpu.pipeline_mode<synchronous>, transform_indices = @transform_1, window_bounds = array<i64: 32, 1>}, {pipeline_mode = #tpu.pipeline_mode<synchronous>, transform_indices = @transform_2, window_bounds = array<i64: 32, 1>}, {pipeline_mode = #tpu.pipeline_mode<synchronous>, transform_indices = @transform_3, window_bounds = array<i64: 96, 32>}, {pipeline_mode = #tpu.pipeline_mode<synchronous>, transform_indices = @transform_4, window_bounds = array<i64: 32, 32>}, {pipeline_mode = #tpu.pipeline_mode<synchronous>, transform_indices = @transform_5, window_bounds = array<i64: 32, 1>}, {transform_indices = @transform_6, window_bounds = array<i64: 1, 32, 128>}]} {
    %c0_i32 = arith.constant 0 : i32
    %0 = arith.cmpi eq, %arg1, %c0_i32 : i32
    %1 = arith.extui %0 : i1 to i32
    %c0_i32_0 = arith.constant 0 : i32
    %2 = arith.cmpi ne, %1, %c0_i32_0 : i32
    scf.if %2 {
      %c0_17 = arith.constant 0 : index
      %c0_18 = arith.constant 0 : index
      %c0_19 = arith.constant 0 : index
      %35 = vector.load %arg2[%c0_17, %c0_18, %c0_19] : memref<1x32x256xf32, #tpu.memory_space<vmem>>, vector<1x32x256xf32>
      %36 = vector.shape_cast %35 : vector<1x32x256xf32> to vector<32x256xf32>
      %37 = vector.extract_strided_slice %36 {offsets = [0, 0], sizes = [8, 256], strides = [1, 1]} : vector<32x256xf32> to vector<8x256xf32>
      %38 = vector.shape_cast %37 : vector<8x256xf32> to vector<1x8x256xf32>
      %cst_20 = arith.constant dense<0.000000e+00> : vector<1xf32>
      %39 = vector.multi_reduction <add>, %38, %cst_20 [1, 2] : vector<1x8x256xf32> to vector<1xf32>
      %40 = vector.shape_cast %39 : vector<1xf32> to vector<1x1x1xf32>
      %41 = vector.extract %40[0, 0, 0] : f32 from vector<1x1x1xf32>
      %42 = vector.broadcast %41 : f32 to vector<1x1xf32>
      %cst_21 = arith.constant 4.8828125E-4 : f32
      %43 = vector.broadcast %cst_21 : f32 to vector<1x1xf32>
      %44 = arith.mulf %42, %43 : vector<1x1xf32>
      %45 = arith.mulf %37, %37 : vector<8x256xf32>
      %46 = vector.shape_cast %45 : vector<8x256xf32> to vector<1x8x256xf32>
      %cst_22 = arith.constant dense<0.000000e+00> : vector<1xf32>
      %47 = vector.multi_reduction <add>, %46, %cst_22 [1, 2] : vector<1x8x256xf32> to vector<1xf32>
      %48 = vector.shape_cast %47 : vector<1xf32> to vector<1x1x1xf32>
      %49 = vector.extract %48[0, 0, 0] : f32 from vector<1x1x1xf32>
      %50 = vector.broadcast %49 : f32 to vector<1x1xf32>
      %cst_23 = arith.constant 4.8828125E-4 : f32
      %51 = vector.broadcast %cst_23 : f32 to vector<1x1xf32>
      %52 = arith.mulf %50, %51 : vector<1x1xf32>
      %53 = arith.mulf %44, %44 : vector<1x1xf32>
      %54 = arith.subf %52, %53 : vector<1x1xf32>
      %cst_24 = arith.constant 9.99999974E-6 : f32
      %55 = vector.broadcast %cst_24 : f32 to vector<1x1xf32>
      %56 = arith.addf %54, %55 : vector<1x1xf32>
      %57 = math.rsqrt %56 : vector<1x1xf32>
      %c0_25 = arith.constant 0 : index
      %c0_26 = arith.constant 0 : index
      %58 = vector.load %arg3[%c0_25, %c0_26] : memref<32x1xf32, #tpu.memory_space<vmem>>, vector<8x1xf32>
      %59 = vector.broadcast %57 : vector<1x1xf32> to vector<8x1xf32>
      %60 = arith.mulf %58, %59 : vector<8x1xf32>
      %c0_27 = arith.constant 0 : index
      %c0_28 = arith.constant 0 : index
      %61 = vector.load %arg4[%c0_27, %c0_28] : memref<32x1xf32, #tpu.memory_space<vmem>>, vector<8x1xf32>
      %62 = vector.broadcast %44 : vector<1x1xf32> to vector<8x1xf32>
      %63 = arith.mulf %62, %60 : vector<8x1xf32>
      %64 = arith.subf %61, %63 : vector<8x1xf32>
      %65 = vector.broadcast %60 : vector<8x1xf32> to vector<8x256xf32>
      %66 = arith.mulf %37, %65 : vector<8x256xf32>
      %67 = vector.broadcast %64 : vector<8x1xf32> to vector<8x256xf32>
      %68 = arith.addf %66, %67 : vector<8x256xf32>
      %c0_29 = arith.constant 0 : index
      %c0_30 = arith.constant 0 : index
      %69 = vector.load %arg9[%c0_29, %c0_30] : memref<32x256xf32, #tpu.memory_space<vmem>>, vector<8x256xf32>
      tpu.vector_store %arg9[%c0_29, %c0_30], %68 {strides = array<i32>} : memref<32x256xf32, #tpu.memory_space<vmem>>, vector<8x256xf32>,
      %70 = vector.extract_strided_slice %36 {offsets = [8, 0], sizes = [8, 256], strides = [1, 1]} : vector<32x256xf32> to vector<8x256xf32>
      %71 = vector.shape_cast %70 : vector<8x256xf32> to vector<1x8x256xf32>
      %cst_31 = arith.constant dense<0.000000e+00> : vector<1xf32>
      %72 = vector.multi_reduction <add>, %71, %cst_31 [1, 2] : vector<1x8x256xf32> to vector<1xf32>
      %73 = vector.shape_cast %72 : vector<1xf32> to vector<1x1x1xf32>
      %74 = vector.extract %73[0, 0, 0] : f32 from vector<1x1x1xf32>
      %75 = vector.broadcast %74 : f32 to vector<1x1xf32>
      %cst_32 = arith.constant 4.8828125E-4 : f32
      %76 = vector.broadcast %cst_32 : f32 to vector<1x1xf32>
      %77 = arith.mulf %75, %76 : vector<1x1xf32>
      %78 = arith.mulf %70, %70 : vector<8x256xf32>
      %79 = vector.shape_cast %78 : vector<8x256xf32> to vector<1x8x256xf32>
      %cst_33 = arith.constant dense<0.000000e+00> : vector<1xf32>
      %80 = vector.multi_reduction <add>, %79, %cst_33 [1, 2] : vector<1x8x256xf32> to vector<1xf32>
      %81 = vector.shape_cast %80 : vector<1xf32> to vector<1x1x1xf32>
      %82 = vector.extract %81[0, 0, 0] : f32 from vector<1x1x1xf32>
      %83 = vector.broadcast %82 : f32 to vector<1x1xf32>
      %cst_34 = arith.constant 4.8828125E-4 : f32
      %84 = vector.broadcast %cst_34 : f32 to vector<1x1xf32>
      %85 = arith.mulf %83, %84 : vector<1x1xf32>
      %86 = arith.mulf %77, %77 : vector<1x1xf32>
      %87 = arith.subf %85, %86 : vector<1x1xf32>
      %cst_35 = arith.constant 9.99999974E-6 : f32
      %88 = vector.broadcast %cst_35 : f32 to vector<1x1xf32>
      %89 = arith.addf %87, %88 : vector<1x1xf32>
      %90 = math.rsqrt %89 : vector<1x1xf32>
      %c8 = arith.constant 8 : index
      %c0_36 = arith.constant 0 : index
      %91 = vector.load %arg3[%c8, %c0_36] : memref<32x1xf32, #tpu.memory_space<vmem>>, vector<8x1xf32>
      %92 = vector.broadcast %90 : vector<1x1xf32> to vector<8x1xf32>
      %93 = arith.mulf %91, %92 : vector<8x1xf32>
      %c8_37 = arith.constant 8 : index
      %c0_38 = arith.constant 0 : index
      %94 = vector.load %arg4[%c8_37, %c0_38] : memref<32x1xf32, #tpu.memory_space<vmem>>, vector<8x1xf32>
      %95 = vector.broadcast %77 : vector<1x1xf32> to vector<8x1xf32>
      %96 = arith.mulf %95, %93 : vector<8x1xf32>
      %97 = arith.subf %94, %96 : vector<8x1xf32>
      %98 = vector.broadcast %93 : vector<8x1xf32> to vector<8x256xf32>
      %99 = arith.mulf %70, %98 : vector<8x256xf32>
      %100 = vector.broadcast %97 : vector<8x1xf32> to vector<8x256xf32>
      %101 = arith.addf %99, %100 : vector<8x256xf32>
      %c8_39 = arith.constant 8 : index
      %c0_40 = arith.constant 0 : index
      %102 = vector.load %arg9[%c8_39, %c0_40] : memref<32x256xf32, #tpu.memory_space<vmem>>, vector<8x256xf32>
      tpu.vector_store %arg9[%c8_39, %c0_40], %101 {strides = array<i32>} : memref<32x256xf32, #tpu.memory_space<vmem>>, vector<8x256xf32>,
      %103 = vector.extract_strided_slice %36 {offsets = [16, 0], sizes = [8, 256], strides = [1, 1]} : vector<32x256xf32> to vector<8x256xf32>
      %104 = vector.shape_cast %103 : vector<8x256xf32> to vector<1x8x256xf32>
      %cst_41 = arith.constant dense<0.000000e+00> : vector<1xf32>
      %105 = vector.multi_reduction <add>, %104, %cst_41 [1, 2] : vector<1x8x256xf32> to vector<1xf32>
      %106 = vector.shape_cast %105 : vector<1xf32> to vector<1x1x1xf32>
      %107 = vector.extract %106[0, 0, 0] : f32 from vector<1x1x1xf32>
      %108 = vector.broadcast %107 : f32 to vector<1x1xf32>
      %cst_42 = arith.constant 4.8828125E-4 : f32
      %109 = vector.broadcast %cst_42 : f32 to vector<1x1xf32>
      %110 = arith.mulf %108, %109 : vector<1x1xf32>
      %111 = arith.mulf %103, %103 : vector<8x256xf32>
      %112 = vector.shape_cast %111 : vector<8x256xf32> to vector<1x8x256xf32>
      %cst_43 = arith.constant dense<0.000000e+00> : vector<1xf32>
      %113 = vector.multi_reduction <add>, %112, %cst_43 [1, 2] : vector<1x8x256xf32> to vector<1xf32>
      %114 = vector.shape_cast %113 : vector<1xf32> to vector<1x1x1xf32>
      %115 = vector.extract %114[0, 0, 0] : f32 from vector<1x1x1xf32>
      %116 = vector.broadcast %115 : f32 to vector<1x1xf32>
      %cst_44 = arith.constant 4.8828125E-4 : f32
      %117 = vector.broadcast %cst_44 : f32 to vector<1x1xf32>
      %118 = arith.mulf %116, %117 : vector<1x1xf32>
      %119 = arith.mulf %110, %110 : vector<1x1xf32>
      %120 = arith.subf %118, %119 : vector<1x1xf32>
      %cst_45 = arith.constant 9.99999974E-6 : f32
      %121 = vector.broadcast %cst_45 : f32 to vector<1x1xf32>
      %122 = arith.addf %120, %121 : vector<1x1xf32>
      %123 = math.rsqrt %122 : vector<1x1xf32>
      %c16 = arith.constant 16 : index
      %c0_46 = arith.constant 0 : index
      %124 = vector.load %arg3[%c16, %c0_46] : memref<32x1xf32, #tpu.memory_space<vmem>>, vector<8x1xf32>
      %125 = vector.broadcast %123 : vector<1x1xf32> to vector<8x1xf32>
      %126 = arith.mulf %124, %125 : vector<8x1xf32>
      %c16_47 = arith.constant 16 : index
      %c0_48 = arith.constant 0 : index
      %127 = vector.load %arg4[%c16_47, %c0_48] : memref<32x1xf32, #tpu.memory_space<vmem>>, vector<8x1xf32>
      %128 = vector.broadcast %110 : vector<1x1xf32> to vector<8x1xf32>
      %129 = arith.mulf %128, %126 : vector<8x1xf32>
      %130 = arith.subf %127, %129 : vector<8x1xf32>
      %131 = vector.broadcast %126 : vector<8x1xf32> to vector<8x256xf32>
      %132 = arith.mulf %103, %131 : vector<8x256xf32>
      %133 = vector.broadcast %130 : vector<8x1xf32> to vector<8x256xf32>
      %134 = arith.addf %132, %133 : vector<8x256xf32>
      %c16_49 = arith.constant 16 : index
      %c0_50 = arith.constant 0 : index
      %135 = vector.load %arg9[%c16_49, %c0_50] : memref<32x256xf32, #tpu.memory_space<vmem>>, vector<8x256xf32>
      tpu.vector_store %arg9[%c16_49, %c0_50], %134 {strides = array<i32>} : memref<32x256xf32, #tpu.memory_space<vmem>>, vector<8x256xf32>,
      %136 = vector.extract_strided_slice %36 {offsets = [24, 0], sizes = [8, 256], strides = [1, 1]} : vector<32x256xf32> to vector<8x256xf32>
      %137 = vector.shape_cast %136 : vector<8x256xf32> to vector<1x8x256xf32>
      %cst_51 = arith.constant dense<0.000000e+00> : vector<1xf32>
      %138 = vector.multi_reduction <add>, %137, %cst_51 [1, 2] : vector<1x8x256xf32> to vector<1xf32>
      %139 = vector.shape_cast %138 : vector<1xf32> to vector<1x1x1xf32>
      %140 = vector.extract %139[0, 0, 0] : f32 from vector<1x1x1xf32>
      %141 = vector.broadcast %140 : f32 to vector<1x1xf32>
      %cst_52 = arith.constant 4.8828125E-4 : f32
      %142 = vector.broadcast %cst_52 : f32 to vector<1x1xf32>
      %143 = arith.mulf %141, %142 : vector<1x1xf32>
      %144 = arith.mulf %136, %136 : vector<8x256xf32>
      %145 = vector.shape_cast %144 : vector<8x256xf32> to vector<1x8x256xf32>
      %cst_53 = arith.constant dense<0.000000e+00> : vector<1xf32>
      %146 = vector.multi_reduction <add>, %145, %cst_53 [1, 2] : vector<1x8x256xf32> to vector<1xf32>
      %147 = vector.shape_cast %146 : vector<1xf32> to vector<1x1x1xf32>
      %148 = vector.extract %147[0, 0, 0] : f32 from vector<1x1x1xf32>
      %149 = vector.broadcast %148 : f32 to vector<1x1xf32>
      %cst_54 = arith.constant 4.8828125E-4 : f32
      %150 = vector.broadcast %cst_54 : f32 to vector<1x1xf32>
      %151 = arith.mulf %149, %150 : vector<1x1xf32>
      %152 = arith.mulf %143, %143 : vector<1x1xf32>
      %153 = arith.subf %151, %152 : vector<1x1xf32>
      %cst_55 = arith.constant 9.99999974E-6 : f32
      %154 = vector.broadcast %cst_55 : f32 to vector<1x1xf32>
      %155 = arith.addf %153, %154 : vector<1x1xf32>
      %156 = math.rsqrt %155 : vector<1x1xf32>
      %c24 = arith.constant 24 : index
      %c0_56 = arith.constant 0 : index
      %157 = vector.load %arg3[%c24, %c0_56] : memref<32x1xf32, #tpu.memory_space<vmem>>, vector<8x1xf32>
      %158 = vector.broadcast %156 : vector<1x1xf32> to vector<8x1xf32>
      %159 = arith.mulf %157, %158 : vector<8x1xf32>
      %c24_57 = arith.constant 24 : index
      %c0_58 = arith.constant 0 : index
      %160 = vector.load %arg4[%c24_57, %c0_58] : memref<32x1xf32, #tpu.memory_space<vmem>>, vector<8x1xf32>
      %161 = vector.broadcast %143 : vector<1x1xf32> to vector<8x1xf32>
      %162 = arith.mulf %161, %159 : vector<8x1xf32>
      %163 = arith.subf %160, %162 : vector<8x1xf32>
      %164 = vector.broadcast %159 : vector<8x1xf32> to vector<8x256xf32>
      %165 = arith.mulf %136, %164 : vector<8x256xf32>
      %166 = vector.broadcast %163 : vector<8x1xf32> to vector<8x256xf32>
      %167 = arith.addf %165, %166 : vector<8x256xf32>
      %c24_59 = arith.constant 24 : index
      %c0_60 = arith.constant 0 : index
      %168 = vector.load %arg9[%c24_59, %c0_60] : memref<32x256xf32, #tpu.memory_space<vmem>>, vector<8x256xf32>
      tpu.vector_store %arg9[%c24_59, %c0_60], %167 {strides = array<i32>} : memref<32x256xf32, #tpu.memory_space<vmem>>, vector<8x256xf32>,
      %c0_61 = arith.constant 0 : index
      %c0_62 = arith.constant 0 : index
      %169 = vector.load %arg5[%c0_61, %c0_62] : memref<96x32xbf16, #tpu.memory_space<vmem>>, vector<96x32xbf16>
      %c0_63 = arith.constant 0 : index
      %c0_64 = arith.constant 0 : index
      %170 = vector.load %arg9[%c0_63, %c0_64] : memref<32x256xf32, #tpu.memory_space<vmem>>, vector<32x256xf32>
      %171 = arith.truncf %170 : vector<32x256xf32> to vector<32x256xbf16>
      %cst_65 = arith.constant dense<0.000000e+00> : vector<96x256xf32>
      %172 = tpu.matmul %169, %171, %cst_65 {dimension_numbers = #tpu.dot_dimension_numbers<[1], [0], [0], [1], [0, 0, 1, 1], [], []>} : vector<96x32xbf16>, vector<32x256xbf16>, vector<96x256xf32> -> vector<96x256xf32>
      %173 = vector.extract_strided_slice %172 {offsets = [0, 0], sizes = [32, 256], strides = [1, 1]} : vector<96x256xf32> to vector<32x256xf32>
      %174 = tpu.transpose %173, [1, 0] : vector<32x256xf32> -> vector<256x32xf32>
      %175 = arith.truncf %174 : vector<256x32xf32> to vector<256x32xbf16>
      %c0_66 = arith.constant 0 : index
      %c0_67 = arith.constant 0 : index
      %176 = vector.load %arg12[%c0_66, %c0_67] : memref<256x32xbf16, #tpu.memory_space<vmem>>, vector<256x32xbf16>
      tpu.vector_store %arg12[%c0_66, %c0_67], %175 {strides = array<i32>} : memref<256x32xbf16, #tpu.memory_space<vmem>>, vector<256x32xbf16>,
      %177 = vector.extract_strided_slice %172 {offsets = [32, 0], sizes = [32, 256], strides = [1, 1]} : vector<96x256xf32> to vector<32x256xf32>
      %178 = arith.truncf %177 : vector<32x256xf32> to vector<32x256xbf16>
      %c0_68 = arith.constant 0 : index
      %c0_69 = arith.constant 0 : index
      %179 = vector.load %arg10[%c0_68, %c0_69] : memref<32x256xbf16, #tpu.memory_space<vmem>>, vector<32x256xbf16>
      tpu.vector_store %arg10[%c0_68, %c0_69], %178 {strides = array<i32>} : memref<32x256xbf16, #tpu.memory_space<vmem>>, vector<32x256xbf16>,
      %180 = vector.extract_strided_slice %172 {offsets = [64, 0], sizes = [32, 256], strides = [1, 1]} : vector<96x256xf32> to vector<32x256xf32>
      %181 = arith.truncf %180 : vector<32x256xf32> to vector<32x256xbf16>
      %c0_70 = arith.constant 0 : index
      %c0_71 = arith.constant 0 : index
      %182 = vector.load %arg11[%c0_70, %c0_71] : memref<34x256xbf16, #tpu.memory_space<vmem>>, vector<32x256xbf16>
      tpu.vector_store %arg11[%c0_70, %c0_71], %181 {strides = array<i32>} : memref<34x256xbf16, #tpu.memory_space<vmem>>, vector<32x256xbf16>,
      %cst_72 = arith.constant 1.000000e+00 : bf16
      %183 = vector.broadcast %cst_72 : bf16 to vector<2x256xbf16>
      %c32 = arith.constant 32 : index
      %c0_73 = arith.constant 0 : index
      %184 = vector.load %arg11[%c32, %c0_73] : memref<34x256xbf16, #tpu.memory_space<vmem>>, vector<2x256xbf16>
      tpu.vector_store %arg11[%c32, %c0_73], %183 {strides = array<i32>} : memref<34x256xbf16, #tpu.memory_space<vmem>>, vector<2x256xbf16>,
    } else {
    }
    %c128_i32 = arith.constant 128 : i32
    %3 = arith.muli %arg1, %c128_i32 : i32
    %4 = tpu.assume_multiple %3, 128 : i32
    %5 = arith.index_cast %4 : i32 to index
    %c0 = arith.constant 0 : index
    %6 = vector.load %arg12[%5, %c0] : memref<256x32xbf16, #tpu.memory_space<vmem>>, vector<128x32xbf16>
    %c0_1 = arith.constant 0 : index
    %c0_2 = arith.constant 0 : index
    %7 = vector.load %arg10[%c0_1, %c0_2] : memref<32x256xbf16, #tpu.memory_space<vmem>>, vector<32x256xbf16>
    %cst = arith.constant dense<0.000000e+00> : vector<128x256xf32>
    %8 = tpu.matmul %6, %7, %cst {dimension_numbers = #tpu.dot_dimension_numbers<[1], [0], [0], [1], [0, 0, 1, 1], [], []>} : vector<128x32xbf16>, vector<32x256xbf16>, vector<128x256xf32> -> vector<128x256xf32>
    %cst_3 = arith.constant dense<0xFF800000> : vector<128xf32>
    %9 = vector.multi_reduction <maximumf>, %8, %cst_3 [1] : vector<128x256xf32> to vector<128xf32>
    %10 = vector.shape_cast %9 : vector<128xf32> to vector<128x1xf32>
    %11 = vector.broadcast %10 : vector<128x1xf32> to vector<128x256xf32>
    %12 = arith.subf %8, %11 : vector<128x256xf32>
    %13 = math.exp %12 : vector<128x256xf32>
    %c0_4 = arith.constant 0 : index
    %c0_5 = arith.constant 0 : index
    %14 = vector.load %arg11[%c0_4, %c0_5] : memref<34x256xbf16, #tpu.memory_space<vmem>>, vector<34x256xbf16>
    %15 = arith.truncf %13 : vector<128x256xf32> to vector<128x256xbf16>
    %cst_6 = arith.constant dense<0.000000e+00> : vector<34x128xf32>
    %16 = tpu.matmul %14, %15, %cst_6 {dimension_numbers = #tpu.dot_dimension_numbers<[1], [1], [0], [0], [0, 0, 1, 0], [], []>} : vector<34x256xbf16>, vector<128x256xbf16>, vector<34x128xf32> -> vector<34x128xf32>
    %17 = vector.extract_strided_slice %16 {offsets = [32, 0], sizes = [1, 128], strides = [1, 1]} : vector<34x128xf32> to vector<1x128xf32>
    %18 = tpu.reciprocal %17 {approx = true} : vector<1x128xf32> -> vector<1x128xf32>
    %19 = vector.extract_strided_slice %16 {offsets = [0, 0], sizes = [32, 128], strides = [1, 1]} : vector<34x128xf32> to vector<32x128xf32>
    %20 = vector.broadcast %18 : vector<1x128xf32> to vector<32x128xf32>
    %21 = arith.mulf %19, %20 : vector<32x128xf32>
    %c0_7 = arith.constant 0 : index
    %c0_8 = arith.constant 0 : index
    %22 = vector.load %arg6[%c0_7, %c0_8] : memref<32x32xbf16, #tpu.memory_space<vmem>>, vector<32x32xbf16>
    %23 = arith.truncf %21 : vector<32x128xf32> to vector<32x128xbf16>
    %cst_9 = arith.constant dense<0.000000e+00> : vector<32x128xf32>
    %24 = tpu.matmul %22, %23, %cst_9 {dimension_numbers = #tpu.dot_dimension_numbers<[1], [0], [0], [1], [0, 0, 1, 1], [], []>} : vector<32x32xbf16>, vector<32x128xbf16>, vector<32x128xf32> -> vector<32x128xf32>
    %c0_10 = arith.constant 0 : index
    %c0_11 = arith.constant 0 : index
    %25 = vector.load %arg7[%c0_10, %c0_11] : memref<32x1xf32, #tpu.memory_space<vmem>>, vector<32x1xf32>
    %26 = vector.broadcast %25 : vector<32x1xf32> to vector<32x128xf32>
    %27 = arith.addf %24, %26 : vector<32x128xf32>
    %c0_12 = arith.constant 0 : index
    %c0_13 = arith.constant 0 : index
    %28 = arith.index_cast %4 : i32 to index
    %29 = vector.load %arg2[%c0_12, %c0_13, %28] : memref<1x32x256xf32, #tpu.memory_space<vmem>>, vector<1x32x128xf32>
    %30 = vector.shape_cast %29 : vector<1x32x128xf32> to vector<32x128xf32>
    %31 = arith.addf %27, %30 : vector<32x128xf32>
    %c0_14 = arith.constant 0 : index
    %c0_15 = arith.constant 0 : index
    %c0_16 = arith.constant 0 : index
    %32 = vector.load %arg8[%c0_14, %c0_15, %c0_16] : memref<1x32x128xf32, #tpu.memory_space<vmem>>, vector<1x32x128xf32>
    %33 = vector.shape_cast %32 : vector<1x32x128xf32> to vector<32x128xf32>
    %34 = vector.shape_cast %31 : vector<32x128xf32> to vector<1x32x128xf32>
    tpu.vector_store %arg8[%c0_14, %c0_15, %c0_16], %34 {strides = array<i32>} : memref<1x32x128xf32, #tpu.memory_space<vmem>>, vector<1x32x128xf32>,
    return
  }
  func.func @transform_0(%arg0: i32, %arg1: i32) -> (i32, i32, i32) {
    %c0_i32 = arith.constant 0 : i32
    %c0_i32_0 = arith.constant 0 : i32
    %c0_i32_1 = arith.constant 0 : i32
    return %arg0, %c0_i32, %c0_i32_0 : i32, i32, i32
  }
  func.func @transform_1(%arg0: i32, %arg1: i32) -> (i32, i32) {
    %c0_i32 = arith.constant 0 : i32
    %c0_i32_0 = arith.constant 0 : i32
    %c0_i32_1 = arith.constant 0 : i32
    return %c0_i32, %c0_i32_0 : i32, i32
  }
  func.func @transform_2(%arg0: i32, %arg1: i32) -> (i32, i32) {
    %c0_i32 = arith.constant 0 : i32
    %c0_i32_0 = arith.constant 0 : i32
    %c0_i32_1 = arith.constant 0 : i32
    return %c0_i32, %c0_i32_0 : i32, i32
  }
  func.func @transform_3(%arg0: i32, %arg1: i32) -> (i32, i32) {
    %c0_i32 = arith.constant 0 : i32
    %c0_i32_0 = arith.constant 0 : i32
    %c0_i32_1 = arith.constant 0 : i32
    return %c0_i32, %c0_i32_0 : i32, i32
  }
  func.func @transform_4(%arg0: i32, %arg1: i32) -> (i32, i32) {
    %c0_i32 = arith.constant 0 : i32
    %c0_i32_0 = arith.constant 0 : i32
    %c0_i32_1 = arith.constant 0 : i32
    return %c0_i32, %c0_i32_0 : i32, i32
  }
  func.func @transform_5(%arg0: i32, %arg1: i32) -> (i32, i32) {
    %c0_i32 = arith.constant 0 : i32
    %c0_i32_0 = arith.constant 0 : i32
    %c0_i32_1 = arith.constant 0 : i32
    return %c0_i32, %c0_i32_0 : i32, i32
  }
  func.func @transform_6(%arg0: i32, %arg1: i32) -> (i32, i32, i32) {
    %c0_i32 = arith.constant 0 : i32
    %c0_i32_0 = arith.constant 0 : i32
    return %arg0, %c0_i32, %arg1 : i32, i32, i32
  }
}

</mosaic_0001>

<bundles_post_ra>
// kernel: tpu_custom_call.1
= control target key start
LH: loop header
LB: loop body
LE: loop exit
PB: predicated region body
PF: predicated region fallthrough
CT: control target
= control target key end

     0   :  { %11 = vsyncpa [#allocation7], 0  ;;  %s2625_s0 = inlined_call_operand.hbm [shape: f32[2,32,256], index: 0, kind: input, shape index: {}]   ;;  %s2626_s1 = inlined_call_operand.vmem [shape: f32[32,1], index: 1, kind: input, shape index: {}]   ;;  %s2627_s2 = inlined_call_operand.vmem [shape: f32[32,1], index: 2, kind: input, shape index: {}]   ;;  %s2628_s3 = inlined_call_operand.vmem [shape: bf16[96,32], index: 3, kind: input, shape index: {}]   ;;  %s2629_s4 = inlined_call_operand.vmem [shape: bf16[32,32], index: 4, kind: input, shape index: {}]   ;;  %s2630_s5 = inlined_call_operand.vmem [shape: f32[32,1], index: 5, kind: input, shape index: {}]   ;;  %s2631_s6 = inlined_call_operand.hbm [shape: f32[2,32,256], index: 6, kind: output, shape index: {}]  }
   0x1   :  { %13 = vsyncpa [#allocation7 + $0x1], 0 }
   0x2   :  { %14 = vsyncpa [#allocation8], 0 }
   0x3   :  { %16 = vsyncpa [#allocation8 + $0x1], 0  ;;  %s2145_s21 = smov 0   ;;  %s2147_s22 = smov 0  }
   0x4   :  { %s2149_s23 = smov 0   ;;  %s2151_s24 = smov 0  }
   0x5   :  { %s2153_s25 = smov 0   ;;  %s2155_s26 = smov 0  }
   0x6   :  { %s2157_s27 = smov 0   ;;  %s2159_s28 = smov 0  }
   0x7   :  { %s2161_s29 = smov 0   ;;  %s2163_s30 = smov 0  }
   0x8   :  { %s2165_s7 = smov 0  }
   0x9 LB: > { %2638 = sst [smem:[#allocation12_spill]] %s2092_s29  ;;  %s1477_s8 = sadd.s32 4294967295, %s2100_s7   ;;  %s2100_s7 = sphi %s2165_s7, %s22_s7   ;;  %s2096_s30 = sphi %s2163_s30, %s2655_s30   ;;  %s2092_s29 = sphi %s2161_s29, %s2654_s29   ;;  %s2088_s28 = sphi %s2159_s28, %s2663_s28   ;;  %s2084_s27 = sphi %s2157_s27, %s2662_s27   ;;  %s2080_s26 = sphi %s2155_s26, %s2661_s26   ;;  %s2076_s25 = sphi %s2153_s25, %s2660_s25   ;;  %s2072_s24 = sphi %s2151_s24, %s2659_s24   ;;  %s2068_s23 = sphi %s2149_s23, %s2658_s23   ;;  %s2064_s22 = sphi %s2147_s22, %s2657_s22   ;;  %s2060_s21 = sphi %s2145_s21, %s2656_s21  }
   0xa   : > { %2639 = sst [smem:[#allocation13_spill]] %s2096_s30  ;;  %s1478_s9 = sadd.s32 4294967294, %s2100_s7  }
   0xb   : > { %s31_s10 = sadd.s32 1, %s2092_s29  ;;  %s34_s11 = sadd.s32 1, %s2096_s30 }
   0xc   : > { %p32_p0 = scmp.ge.s32.totalorder %s31_s10, 2  ;;  %s41_s12 = sadd.s32 1, %s2080_s26 }
   0xd   : > { %p48_p1 = scmp.ne.s32.totalorder %s2080_s26, %s2076_s25  ;;  %p49_p2 = scmp.eq.s32.totalorder %s2100_s7, 0 }
   0xe   : > { %s2665_s10 = smov (%p32_p0, %s31_s10), 0  ;;  %s2667_s11 = smov (!%p32_p0, %s34_s11), %s2096_s30 }
   0xf   : > { %2640 = sst [smem:[#allocation14_spill]] %s2665_s10  ;;  %p2209_p3 = por %p49_p2, %p48_p1 }
  0x10   : > { %p54_p4 = scmp.ne.s32.totalorder %s2076_s25, %s2072_s24  ;;  %p36_p5 = scmp.ge.s32.totalorder %s2667_s11, 2 }
  0x11   : > { %p55_p6 = scmp.eq.s32.totalorder %s1477_s8, 0  ;;  %s170_s14 = ssub.s32 %s2092_s29, %s2665_s10 }
  0x12   : > { %s174_s15 = sadd.s32 1, %s2068_s23  ;;  %s2669_s11 = smov (%p36_p5, %s2667_s11), 0 }
  0x13   : > { %2642 = sst [smem:[#allocation15_spill]] %s2669_s11  ;;  %p2219_p7 = por %p55_p6, %p54_p4 }
  0x14   : > { %p184_p8 = scmp.ne.s32.totalorder %s2068_s23, %s2064_s22  ;;  %s38_s17 = ssub.s32 %s2096_s30, %s2669_s11 }
  0x15   : > { %p185_p9 = scmp.eq.s32.totalorder %s1477_s8, 3  ;;  %p39_p10 = scmp.eq.s32.totalorder %s38_s17, 0 }
  0x16   : > { %s171_s18 = sor.u32 %s170_s14, %s38_s17  ;;  %p190_p13 = scmp.ne.s32.totalorder %s2064_s22, %s2060_s21 }
  0x17   : > { %p172_p11 = scmp.eq.s32.totalorder %s171_s18, 0  ;;  %p2227_p12 = por %p185_p9, %p184_p8 }
  0x18   : > { %s2232_s20 = scalar_select %p39_p10, %s2080_s26, %s41_s12  }
  0x19   : > { %s2644_s19 = scalar_select %p2227_p12, 1, 0 }
  0x1a   : > { %2646 = sst [smem:[#allocation17_spill]] %s2232_s20  ;;  %p191_p0 = scmp.eq.s32.totalorder %s1478_s9, 3 }
  0x1b   : > { %2645 = sst [smem:[#allocation16_spill]] %s2644_s19  ;;  %p1681_p1 = scmp.lt.s32.totalorder %s2100_s7, 4 }
  0x1c   : > { %s2235_s24 = scalar_select %p172_p11, %s2068_s23, %s174_s15  }
  0x1d   : > { %p2240_p2 = por %p191_p0, %p190_p13  ;;  %s226_s8 = sand.u32 1, %s2080_s26  }
  0x1e   : > { %2647 = sst [smem:[#allocation18_spill]] %s2235_s24  ;;  %s1481_s14 = sshll.u32 %s226_s8, 6 }
  0x1f   : > { %s1622_s17 = sshll.u32 %s2096_s30, 6  ;;  %s230_s12 = scalar_lea.vmem [#allocation6], %s1481_s14 }
  0x20   : > { %s235_s29 = scalar_lea.hbm %s2625_s0, %s1622_s17  ;;  %s238_s20 = sshll.u32 %s230_s12, 4  ;;  %s239_s20 = int_to_ptr.vmem [resolvable:$true] %s238_s20 }
  0x21   : > { %s236_s19 = sshll.u32 %s235_s29, 4  ;;  %p1674_p4 = pnand %p1681_p1, %p2209_p3  ;;  %s237_s19 = int_to_ptr.hbm [resolvable:$true] %s236_s19 }
  0x22   : > { %p1484_p5 = scmp.ge.s32.totalorder %s2100_s7, 1  ;;  %s227_s9 = scalar_lea.sflag [#allocation7], %s226_s8 }
  0x23   : > { %s2102_s15 = smov 256   ;;  %s2103_s24 = smov 16  }
  0x24   : > { %1676 = dma.hbm_to_vmem [thread:$0]  (!%p1674_p4), %s237_s19, 1024, %s239_s20, %s227_s9, %s2102_s15, %s2102_s15, %s2103_s24  }
  0x25   : > { %p246_p6 = scmp.lt.s32.totalorder %s2100_s7, 5 }
  0x27   : > { %p247_p8 = pnand %p1484_p5, %p246_p6 }
  0x28   : > { %s252_s30 = sand.u32 (!%p247_p8), 1, %s2076_s25  }
  0x29   : > { %250 = sbr.rel (%p247_p8) target bundleno = 1621 (0x655), region = 44  ;;  %s1485_s11 = sshll.u32 (!%p247_p8), %s252_s30, 6 }
  0x2a   : > { %s253_s17 = scalar_lea.sflag (!%p247_p8), [#allocation7], %s252_s30  ;;  %s2254_s14 = scalar_lea.vmem (!%p247_p8), [#allocation6], %s1485_s11 }
  0x2e   : > { %2051 = dma.done.wait (%p2219_p7), %s253_s17, 1024  }
  0x2f   : > { %2053 = vsyncadd (%p2219_p7), %s253_s17, 4294966272  ;;  %s283_s29 = sand.u32 1, %s2064_s22   ;;  %p1487_p3 = scmp.ne.s32.totalorder %s2084_s27, 0 }
  0x30   : > { %s1486_s13 = sshll.u32 %s283_s29, 5 }
  0x31   : > { %s2263_s19 = scalar_lea.vmem [#allocation9], %s1486_s13  ;;  %291 = sbr.rel (%p1487_p3) target bundleno = 832 (0x340), region = 52 }
  0x36   : > { %v2267_v0 = vld [vmem:[%s2254_s14 + $0x20] sm:$0xff]  ;;  %v2270_v1 = vld [vmem:[%s2254_s14 + $0x28] sm:$0xff]  ;;  %v2273_v2 = vld [vmem:[%s2254_s14 + $0x10] sm:$0xff]  ;;  %vm594_vm12 = vcmask 261120   ;;  %vm787_vm13 = vcmask 257024  }
  0x37   : > { %v420_v3 = vadd.f32 %v2270_v1, %v2267_v0  ;;  %v2278_v4 = vld [vmem:[%s2254_s14 + $0x18] sm:$0xff]  ;;  %v2281_v5 = vld [vmem:[%s2254_s14] sm:$0xff]  ;;  %v2284_v6 = vld [vmem:[%s2254_s14 + $0x8] sm:$0xff]  ;;  %v432_v9 = vmul.f32 %v2267_v0, %v2267_v0  ;;  %v433_v10 = vmul.f32 %v2270_v1, %v2270_v1  ;;  %v372_v11 = vmul.f32 %v2273_v2, %v2273_v2 }
  0x38   : > { %v360_v7 = vadd.f32 %v2278_v4, %v2273_v2  ;;  %v300_v8 = vadd.f32 %v2284_v6, %v2281_v5  ;;  %v373_v12 = vmul.f32 %v2278_v4, %v2278_v4  ;;  %v312_v13 = vmul.f32 %v2281_v5, %v2281_v5  ;;  %v2303_v18 = vld [vmem:[%s2254_s14 + $0x30] sm:$0xff]  ;;  %v2306_v19 = vld [vmem:[%s2254_s14 + $0x38] sm:$0xff] }
  0x39   : > { %421 = vadd.xlane.f32.xlu2 %v420_v3  ;;  %v313_v14 = vmul.f32 %v2284_v6, %v2284_v6  ;;  %v434_v15 = vadd.f32 %v433_v10, %v432_v9  ;;  %v492_v20 = vmul.f32 %v2303_v18, %v2303_v18  ;;  %v493_v21 = vmul.f32 %v2306_v19, %v2306_v19 }
  0x3a   : > { %361 = vadd.xlane.f32.xlu1 %v360_v7  ;;  %301 = vadd.xlane.f32.xlu0 %v300_v8  ;;  %v374_v16 = vadd.f32 %v373_v12, %v372_v11  ;;  %v480_v23 = vadd.f32 %v2306_v19, %v2303_v18 }
  0x3b   : > { %v314_v17 = vadd.f32 %v313_v14, %v312_v13  ;;  %v494_v22 = vadd.f32 %v493_v21, %v492_v20 }
  0x41   : > { %435 = vadd.xlane.f32.xlu2 %v434_v15 }
  0x42   : > { %375 = vadd.xlane.f32.xlu1 %v374_v16  ;;  %315 = vadd.xlane.f32.xlu0 %v314_v17 }
  0x4a   : > { %495 = vadd.xlane.f32.xlu1 %v494_v22  ;;  %481 = vadd.xlane.f32.xlu0 %v480_v23 }
  0xac   : > { %v422_v24 = vpop.xlane.xlu2 %421 }
  0xad   : > { %v362_v25 = vpop.xlane.xlu1 %361  ;;  %v302_v26 = vpop.xlane.xlu0 %301  ;;  %v423_v29 = vrot.slane %v422_v24, 4 }
  0xae   : > { %v363_v27 = vrot.slane %v362_v25, 4  ;;  %v303_v28 = vrot.slane %v302_v26, 4 }
  0xaf   : > { %v424_v33 = vadd.f32 %v423_v29, %v422_v24 }
  0xb0   : > { %v304_v30 = vadd.f32 %v303_v28, %v302_v26  ;;  %v364_v31 = vadd.f32 %v363_v27, %v362_v25  ;;  %v2104_v26 = vmov 0  }
  0xb1   : > { %v425_v43 = vrot.slane %v424_v33, 2  ;;  %1782 = vset.pattern.permute.xlu1 %v2104_v26  ;;  %1780 = vset.pattern.permute.xlu2 %v2104_v26 }
  0xb2   : > { %v305_v32 = vrot.slane %v304_v30, 2  ;;  %v365_v36 = vrot.slane %v364_v31, 2  ;;  %1781 = vset.pattern.permute.xlu0 %v2104_v26 }
  0xb3   : > { %v426_v52 = vadd.f32 %v425_v43, %v424_v33 }
  0xb4   : > { %v436_v34 = vpop.xlane.xlu2 %435  ;;  %v306_v35 = vadd.f32 %v305_v32, %v304_v30  ;;  %v366_v49 = vadd.f32 %v365_v36, %v364_v31 }
  0xb5   : > { %v437_v37 = vrot.slane %v436_v34, 4  ;;  %v376_v38 = vpop.xlane.xlu1 %375  ;;  %v316_v39 = vpop.xlane.xlu0 %315  ;;  %v427_v3 = vrot.slane %v426_v52, 1 }
  0xb6   : > { %v377_v40 = vrot.slane %v376_v38, 4  ;;  %v317_v41 = vrot.slane %v316_v39, 4  ;;  %v307_v42 = vrot.slane %v306_v35, 1  ;;  %v367_v58 = vrot.slane %v366_v49, 1 }
  0xb7   : > { %v438_v44 = vadd.f32 %v437_v37, %v436_v34  ;;  %v428_v15 = vadd.f32 %v427_v3, %v426_v52 }
  0xb8   : > { %v378_v45 = vadd.f32 %v377_v40, %v376_v38  ;;  %v318_v46 = vadd.f32 %v317_v41, %v316_v39  ;;  %v308_v47 = vadd.f32 %v307_v42, %v306_v35  ;;  %v368_v11 = vadd.f32 %v367_v58, %v366_v49 }
  0xb9   : > { %v439_v48 = vrot.slane %v438_v44, 2 }
  0xba   : > { %v379_v50 = vrot.slane %v378_v45, 2  ;;  %v319_v51 = vrot.slane %v318_v46, 2  ;;  %1653 = vpush %v308_v47 }
  0xbb   : > { %v440_v53 = vadd.f32 %v439_v48, %v438_v44 }
  0xbc   : > { %v320_v54 = vadd.f32 %v319_v51, %v318_v46  ;;  %v380_v55 = vadd.f32 %v379_v50, %v378_v45 }
  0xbd   : > { %v496_v56 = vpop.xlane.xlu1 %495  ;;  %v482_v57 = vpop.xlane.xlu0 %481  ;;  %v441_v59 = vrot.slane %v440_v53, 1 }
  0xbe   : > { %v497_v60 = vrot.slane %v496_v56, 4  ;;  %v483_v61 = vrot.slane %v482_v57, 4  ;;  %v321_v62 = vrot.slane %v320_v54, 1  ;;  %v381_v63 = vrot.slane %v380_v55, 1 }
  0xbf   : > { %v442_v14 = vadd.f32 %v441_v59, %v440_v53 }
  0xc0   : > { %v498_v7 = vadd.f32 %v497_v60, %v496_v56  ;;  %v484_v8 = vadd.f32 %v483_v61, %v482_v57  ;;  %v322_v9 = vadd.f32 %v321_v62, %v320_v54  ;;  %v382_v10 = vadd.f32 %v381_v63, %v380_v55 }
  0xc2   : > { %v499_v12 = vrot.slane %v498_v7, 2  ;;  %v485_v13 = vrot.slane %v484_v8, 2  ;;  %1655 = vpush %v322_v9 }
  0xc3   : > { %1657 = vpush %v368_v11 }
  0xc4   : > { %1659 = vpush %v382_v10  ;;  %v486_v16 = vadd.f32 %v485_v13, %v484_v8  ;;  %v500_v17 = vadd.f32 %v499_v12, %v498_v7  ;;  %v399_v12 = vld [vmem:[%s2626_s1 + $0x8] sm:$0xff] }
  0xc5   : > { %1661 = vpush %v428_v15 }
  0xc6   : > { %1663 = vpush %v442_v14  ;;  %v487_v20 = vrot.slane %v486_v16, 1  ;;  %v501_v21 = vrot.slane %v500_v17, 1 }
  0xc8   : > { %v488_v22 = vadd.f32 %v487_v20, %v486_v16  ;;  %v502_v23 = vadd.f32 %v501_v21, %v500_v17  ;;  %v459_v16 = vld [vmem:[%s2626_s1 + $0x10] sm:$0xff] }
  0xca   : > { %1665 = vpush %v488_v22 }
  0xcb   : > { %1667 = vpush %v502_v23 }
  0xeb   : > { %s1654_s30 = spop %1653 }
  0xec   : > { %v310_v24 = vstv %s1654_s30 }
  0xed   : > { %v2314_v25 = vmul.f32 0.00048828125, %v310_v24 }
  0xef   : > { %v326_v28 = vmul.f32 %v2314_v25, %v2314_v25 }
  0xf3   : > { %s1656_s16 = spop %1655 }
  0xf4   : > { %v324_v27 = vstv %s1656_s16  ;;  %s1658_s20 = spop %1657 }
  0xf5   : > { %v325_v29 = vmul.f32 0.00048828125, %v324_v27  ;;  %v370_v30 = vstv %s1658_s20  ;;  %s1660_s24 = spop %1659 }
  0xf6   : > { %v2318_v31 = vmul.f32 0.00048828125, %v370_v30  ;;  %v384_v32 = vstv %s1660_s24  ;;  %s1662_s8 = spop %1661  ;;  %v461_v30 = vld [vmem:[%s2627_s2 + $0x10] sm:$0xff] }
  0xf7   : > { %v327_v33 = vsub.f32 %v325_v29, %v326_v28  ;;  %v430_v34 = vstv %s1662_s8  ;;  %s1664_s18 = spop %1663  ;;  %v385_v36 = vmul.f32 0.00048828125, %v384_v32  ;;  %v519_v29 = vld [vmem:[%s2626_s1 + $0x18] sm:$0xff] }
  0xf8   : > { %v386_v35 = vmul.f32 %v2318_v31, %v2318_v31  ;;  %v431_v37 = vmul.f32 0.00048828125, %v430_v34  ;;  %v444_v38 = vstv %s1664_s18  ;;  %v339_v34 = vld [vmem:[%s2626_s1] sm:$0xff] }
  0xf9   : > { %v2322_v39 = vadd.f32 1e-05, %v327_v33  ;;  %v445_v42 = vmul.f32 0.00048828125, %v444_v38 }
  0xfa   : > { %v387_v40 = vsub.f32 %v385_v36, %v386_v35  ;;  %v446_v41 = vmul.f32 %v431_v37, %v431_v37 }
  0xfb   : > { %1871 = vrsqrt.f32 %v2322_v39  ;;  %s1666_s12 = spop %1665  ;;  %vm335_vm9 = vweird.f32 %v2322_v39 }
  0xfc   : > { %v388_v43 = vadd.f32 1e-05, %v387_v40  ;;  %v447_v44 = vsub.f32 %v445_v42, %v446_v41  ;;  %v490_v45 = vstv %s1666_s12  ;;  %s1668_s9 = spop %1667  ;;  %v521_v41 = vld [vmem:[%s2627_s2 + $0x18] sm:$0xff] }
  0xfd   : > { %v2325_v46 = vmul.f32 0.00048828125, %v490_v45  ;;  %v504_v47 = vstv %s1668_s9 }
  0xfe   : > { %1873 = vrsqrt.f32 %v388_v43  ;;  %v448_v48 = vadd.f32 1e-05, %v447_v44  ;;  %v505_v50 = vmul.f32 0.00048828125, %v504_v47  ;;  %vm395_vm1 = vweird.f32 %v388_v43 }
  0xff   : > { %v506_v49 = vmul.f32 %v2325_v46, %v2325_v46 }
 0x100   : > { %1875 = vrsqrt.f32 %v448_v48  ;;  %vm455_vm4 = vweird.f32 %v448_v48 }
 0x101   : > { %v1872_v51 = vpop.eup %1871  ;;  %v507_v52 = vsub.f32 %v505_v50, %v506_v49 }
 0x102   : > { %v330_v53 = vmul.f32 %v1872_v51, %v2322_v39  ;;  %vm336_vm7 = vweird.f32 %v1872_v51  ;;  %v401_v39 = vld [vmem:[%s2627_s2 + $0x8] sm:$0xff] }
 0x103   : > { %v508_v54 = vadd.f32 1e-05, %v507_v52  ;;  %vm337_vm11 = vmor %vm335_vm9, %vm336_vm7 }
 0x104   : > { %v1874_v55 = vpop.eup %1873  ;;  %v331_v58 = vmul.f32 %v1872_v51, %v330_v53 }
 0x105   : > { %v390_v56 = vmul.f32 %v1874_v55, %v388_v43  ;;  %1877 = vrsqrt.f32 %v508_v54  ;;  %vm396_vm0 = vweird.f32 %v1874_v55  ;;  %vm515_vm8 = vweird.f32 %v508_v54 }
 0x106   : > { %v1876_v57 = vpop.eup %1875  ;;  %v332_v3 = vmul.f32 0.5, %v331_v58  ;;  %vm397_vm3 = vmor %vm395_vm1, %vm396_vm0 }
 0x107   : > { %v391_v59 = vmul.f32 %v1874_v55, %v390_v56  ;;  %v450_v60 = vmul.f32 %v1876_v57, %v448_v48  ;;  %vm456_vm2 = vweird.f32 %v1876_v57 }
 0x108   : > { %v333_v14 = vsub.f32 1.5, %v332_v3  ;;  %vm457_vm5 = vmor %vm455_vm4, %vm456_vm2 }
 0x109   : > { %v392_v61 = vmul.f32 0.5, %v391_v59  ;;  %v451_v62 = vmul.f32 %v1876_v57, %v450_v60 }
 0x10a   : > { %v334_v26 = vmul.f32 %v1872_v51, %v333_v14 }
 0x10b   : > { %v1878_v63 = vpop.eup %1877  ;;  %v393_v7 = vsub.f32 1.5, %v392_v61  ;;  %v452_v8 = vmul.f32 0.5, %v451_v62 }
 0x10c   : > { %v510_v9 = vmul.f32 %v1878_v63, %v508_v54  ;;  %vm516_vm6 = vweird.f32 %v1878_v63  ;;  %v338_v33 = vsel %vm337_vm11, %v1872_v51, %v334_v26 }
 0x10d   : > { %v453_v10 = vsub.f32 1.5, %v452_v8  ;;  %v394_v11 = vmul.f32 %v1874_v55, %v393_v7  ;;  %vm517_vm10 = vmor %vm515_vm8, %vm516_vm6 }
 0x10e   : > { %v511_v13 = vmul.f32 %v1878_v63, %v510_v9 }
 0x10f   : > { %v454_v15 = vmul.f32 %v1876_v57, %v453_v10  ;;  %v398_v17 = vsel %vm397_vm3, %v1874_v55, %v394_v11 }
 0x110   : > { %v512_v20 = vmul.f32 0.5, %v511_v13  ;;  %v400_v21 = vmul.f32 %v399_v12, %v398_v17  ;;  %v1627_v17 = vld [vmem:[%s2628_s3 + $0x20] sm:$0xff] }
 0x111   : > { %v458_v22 = vsel %vm457_vm5, %v1876_v57, %v454_v15 }
 0x112   : > { %v513_v23 = vsub.f32 1.5, %v512_v20  ;;  %v460_v24 = vmul.f32 %v459_v16, %v458_v22  ;;  %406 = vperm.xlu1 %1782, %v400_v21   ;;  %v402_v38 = vmul.f32 %v400_v21, %v2318_v31  ;;  %v341_v31 = vld [vmem:[%s2627_s2] sm:$0xff] }
 0x114   : > { %466 = vperm.xlu2 %1780, %v460_v24   ;;  %v462_v27 = vmul.f32 %v460_v24, %v431_v37  ;;  %v514_v28 = vmul.f32 %v1878_v63, %v513_v23  ;;  %v340_v37 = vmul.f32 %v339_v34, %v338_v33  ;;  %v403_v42 = vsub.f32 %v401_v39, %v402_v38 }
 0x116   : > { %v518_v32 = vsel %vm517_vm10, %v1878_v63, %v514_v28  ;;  %v463_v36 = vsub.f32 %v461_v30, %v462_v27  ;;  %v342_v44 = vmul.f32 %v340_v37, %v2314_v25  ;;  %v1628_v27 = vld [vmem:[%s2628_s3 + $0x28] sm:$0xff] }
 0x117   : > { %v520_v35 = vmul.f32 %v519_v29, %v518_v32 }
 0x118   : > { %v343_v45 = vsub.f32 %v341_v31, %v342_v44 }
 0x119   : > { %526 = vperm.xlu0 %1781, %v520_v35   ;;  %v522_v40 = vmul.f32 %v520_v35, %v2325_v46 }
 0x11a   : > { %473 = vperm.xlu1 %1782, %v463_v36  }
 0x11b   : > { %v523_v43 = vsub.f32 %v521_v41, %v522_v40 }
 0x11c   : > { %346 = vperm.xlu2 %1780, %v340_v37  }
 0x122   : > { %413 = vperm.xlu1 %1782, %v403_v42  }
 0x124   : > { %533 = vperm.xlu2 %1780, %v523_v43  }
 0x12c   : > { %353 = vperm.xlu2 %1780, %v343_v45  }
 0x16e   : > { %v467_v47 = vpop.permute.xlu2 %466 }
 0x16f   : > { %v469_v51 = vmul.f32 %v467_v47, %v2267_v0  ;;  %v470_v52 = vmul.f32 %v467_v47, %v2270_v1 }
 0x176   : > { %v347_v48 = vpop.permute.xlu2 %346 }
 0x177   : > { %v349_v61 = vmul.f32 %v347_v48, %v2281_v5  ;;  %v350_v0 = vmul.f32 %v347_v48, %v2284_v6  ;;  %v1623_v5 = vld [vmem:[%s2628_s3] sm:$0xff]  ;;  %v1625_v6 = vld [vmem:[%s2628_s3 + $0x10] sm:$0xff] }
 0x17e   : > { %v534_v46 = vpop.permute.xlu2 %533 }
 0x184   : > { %v407_v49 = vpop.permute.xlu1 %406 }
 0x185   : > { %v409_v1 = vmul.f32 %v407_v49, %v2273_v2  ;;  %v410_v63 = vmul.f32 %v407_v49, %v2278_v4  ;;  %v1624_v2 = vld [vmem:[%s2628_s3 + $0x8] sm:$0xff]  ;;  %v1626_v4 = vld [vmem:[%s2628_s3 + $0x18] sm:$0xff] }
 0x186   : > { %v354_v62 = vpop.permute.xlu2 %353 }
 0x187   : > { %v357_v3 = vadd.f32 %v354_v62, %v350_v0 }
 0x18b   : > { %v527_v50 = vpop.permute.xlu0 %526 }
 0x18c   : > { %v474_v53 = vpop.permute.xlu1 %473  ;;  %v529_v54 = vmul.f32 %v527_v50, %v2303_v18  ;;  %v530_v25 = vmul.f32 %v527_v50, %v2306_v19  ;;  %v356_v19 = vadd.f32 %v354_v62, %v349_v61 }
 0x18d   : > { %v476_v55 = vadd.f32 %v474_v53, %v469_v51  ;;  %v477_v56 = vadd.f32 %v474_v53, %v470_v52 }
 0x18e   : > { %v536_v57 = vadd.f32 %v534_v46, %v529_v54  ;;  %v537_v58 = vadd.f32 %v534_v46, %v530_v25 }
 0x190   : > { %v562_v59 = vpack.c.bf16 %v536_v57, %v476_v55  ;;  %v563_v60 = vpack.c.bf16 %v537_v58, %v477_v56 }
 0x192   : > { %619 = vmatpush.bf16.msra.mxu0 %v562_v59  ;;  %1647 = vmatpush.bf16.msra.mxu2 %v562_v59 }
 0x193   : > { %658 = vmatpush.bf16.msra.mxu1 %v563_v60  ;;  %1649 = vmatpush.bf16.msra.mxu3 %v563_v60 }
 0x194   : > { %v414_v18 = vpop.permute.xlu1 %413 }
 0x195   : > { %v416_v7 = vadd.f32 %v414_v18, %v409_v1  ;;  %v417_v8 = vadd.f32 %v414_v18, %v410_v63 }
 0x197   : > { %v560_v9 = vpack.c.bf16 %v416_v7, %v356_v19  ;;  %v561_v10 = vpack.c.bf16 %v417_v8, %v357_v3 }
 0x199   : > { %620 = vmatpush.bf16.msra.mxu0 %v560_v9  ;;  %1648 = vmatpush.bf16.msra.mxu2 %v560_v9 }
 0x19a   : > { %659 = vmatpush.bf16.msra.mxu1 %v561_v10  ;;  %1650 = vmatpush.bf16.msra.mxu3 %v561_v10 }
 0x19c   : > { %1512 = vmatmul.msk.bf16.vlgmr.msra.gmra.mxu0 %vm594_vm12, %v1623_v5  ;;  %1515 = vmatmul.msk.bf16.vlgmr.msra.gmra.mxu2 %vm594_vm12, %v1626_v4 }
 0x19d   : > { %1518 = vmatmul.msk.bf16.vlgmr.msra.gmra.mxu1 %vm594_vm12, %v1623_v5  ;;  %1521 = vmatmul.msk.bf16.vlgmr.msra.gmra.mxu3 %vm594_vm12, %v1626_v4 }
 0x1ac   : > { %1513 = vmatmul.msk.bf16.gmra.mxu0 %vm594_vm12, %v1624_v2  ;;  %1516 = vmatmul.msk.bf16.gmra.mxu2 %vm594_vm12, %v1627_v17 }
 0x1ad   : > { %1519 = vmatmul.msk.bf16.gmra.mxu1 %vm594_vm12, %v1624_v2  ;;  %1522 = vmatmul.msk.bf16.gmra.mxu3 %vm594_vm12, %v1627_v17 }
 0x1bc   : > { %1514 = vmatmul.msk.bf16.gmra.mxu0 %vm594_vm12, %v1625_v6  ;;  %1517 = vmatmul.msk.bf16.gmra.mxu2 %vm594_vm12, %v1628_v27 }
 0x1bd   : > { %1520 = vmatmul.msk.bf16.gmra.mxu1 %vm594_vm12, %v1625_v6  ;;  %1523 = vmatmul.msk.bf16.gmra.mxu3 %vm594_vm12, %v1628_v27 }
 0x219   : > { %v622_v11 = vpop.f32.mrf.mxu0 }
 0x21a   : > { %v661_v12 = vpop.f32.mrf.mxu1 }
 0x21b   : > { %v1783_v13 = vpack.i.bf16 %v661_v12, %v622_v11 }
 0x21d   : > { %1784 = vxpose.xlu0.b32.start [1/4] (short) %v1783_v13, 128 }
 0x21f   : > { %v637_v57 = vpop.f32.mrf.mxu2 }
 0x220   : > { %v676_v58 = vpop.f32.mrf.mxu3 }
 0x221   : > { %v624_v14 = vpop.f32.mrf.mxu0  ;;  %v822_v59 = vpack.c.bf16 %v676_v58, %v637_v57 }
 0x222   : > { %v663_v15 = vpop.f32.mrf.mxu1 }
 0x223   : > { %v1785_v16 = vpack.i.bf16 %v663_v15, %v624_v14  ;;  %826 = vst [vmem:[#allocation3 + $0x10] sm:$0xff] %v822_v59 }
 0x225   : > { %1786 = vxpose.xlu0.b32.cont [2/4] (short) %v1785_v16, 128 }
 0x227   : > { %v639_v63 = vpop.f32.mrf.mxu2 }
 0x228   : > { %v678_v18 = vpop.f32.mrf.mxu3 }
 0x229   : > { %v627_v20 = vpop.f32.mrf.mxu0  ;;  %v823_v19 = vpack.c.bf16 %v678_v18, %v639_v63 }
 0x22a   : > { %v666_v21 = vpop.f32.mrf.mxu1 }
 0x22b   : > { %v1787_v22 = vpack.i.bf16 %v666_v21, %v627_v20  ;;  %827 = vst [vmem:[#allocation3 + $0x18] sm:$0xff] %v823_v19 }
 0x22d   : > { %1788 = vxpose.xlu0.b32.cont [3/4] (short) %v1787_v22, 128 }
 0x22f   : > { %v642_v5 = vpop.f32.mrf.mxu2 }
 0x230   : > { %v681_v2 = vpop.f32.mrf.mxu3 }
 0x231   : > { %v629_v23 = vpop.f32.mrf.mxu0  ;;  %v828_v4 = vpack.c.bf16 %v681_v2, %v642_v5 }
 0x232   : > { %v668_v24 = vpop.f32.mrf.mxu1 }
 0x233   : > { %v1789_v26 = vpack.i.bf16 %v668_v24, %v629_v23  ;;  %832 = vst [vmem:[#allocation4] sm:$0xff] %v828_v4 }
 0x235   : > { %1790 = vxpose.xlu0.b32.end [4/4] (short) %v1789_v26, 128 }
 0x237   : > { %v644_v15 = vpop.f32.mrf.mxu2 }
 0x238   : > { %v683_v16 = vpop.f32.mrf.mxu3 }
 0x239   : > { %v829_v17 = vpack.c.bf16 %v683_v16, %v644_v15  ;;  %v632_v26 = vpop.f32.mrf.mxu0 }
 0x23b   : > { %833 = vst [vmem:[#allocation4 + $0x8] sm:$0xff] %v829_v17 }
 0x23f   : > { %v647_v27 = vpop.f32.mrf.mxu2 }
 0x2c1   : > { %v1791_v28 = vpop.trf.xlu0 }
 0x2c2   : > { %v1795_v29 = vunpack.i.h.bf16 %v1791_v28  ;;  %v1792_v30 = vunpack.i.l.bf16 %v1791_v28  ;;  %v671_v28 = vpop.f32.mrf.mxu1 }
 0x2c4   : > { %v771_v32 = vpack.c.bf16 %v1795_v29, %v1795_v29  ;;  %v755_v33 = vpack.c.bf16 %v1792_v30, %v1792_v30  ;;  %v686_v29 = vpop.f32.mrf.mxu3  ;;  %v820_v30 = vpack.c.bf16 %v671_v28, %v632_v26 }
 0x2c6   : > { %804 = vst.msk [vmem:[#allocation5 + $0x40] sm:$0xf] %vm787_vm13, %v771_v32  ;;  %v830_v32 = vpack.c.bf16 %v686_v29, %v647_v27 }
 0x2c7   : > { %788 = vst.msk [vmem:[#allocation5] sm:$0xf] %vm787_vm13, %v755_v33 }
 0x2c8   : > { %824 = vst [vmem:[#allocation3] sm:$0xff] %v820_v30 }
 0x2c9   : > { %v1796_v34 = vpop.trf.xlu0  ;;  %834 = vst [vmem:[#allocation4 + $0x10] sm:$0xff] %v830_v32 }
 0x2ca   : > { %v1800_v35 = vunpack.i.h.bf16 %v1796_v34  ;;  %v1797_v36 = vunpack.i.l.bf16 %v1796_v34 }
 0x2cc   : > { %v772_v37 = vpack.c.bf16 %v1800_v35, %v1800_v35  ;;  %v756_v38 = vpack.c.bf16 %v1797_v36, %v1797_v36 }
 0x2ce   : > { %805 = vst.msk [vmem:[#allocation5 + $0x44] sm:$0xf] %vm787_vm13, %v772_v37 }
 0x2cf   : > { %789 = vst.msk [vmem:[#allocation5 + $0x4] sm:$0xf] %vm787_vm13, %v756_v38  ;;  %v634_v38 = vpop.f32.mrf.mxu0 }
 0x2d1   : > { %v1801_v39 = vpop.trf.xlu0 }
 0x2d2   : > { %v1805_v40 = vunpack.i.h.bf16 %v1801_v39  ;;  %v1802_v41 = vunpack.i.l.bf16 %v1801_v39  ;;  %v649_v39 = vpop.f32.mrf.mxu2 }
 0x2d4   : > { %v773_v42 = vpack.c.bf16 %v1805_v40, %v1805_v40  ;;  %v757_v43 = vpack.c.bf16 %v1802_v41, %v1802_v41  ;;  %v673_v40 = vpop.f32.mrf.mxu1  ;;  %v688_v41 = vpop.f32.mrf.mxu3 }
 0x2d6   : > { %806 = vst.msk [vmem:[#allocation5 + $0x48] sm:$0xf] %vm787_vm13, %v773_v42  ;;  %v821_v42 = vpack.c.bf16 %v673_v40, %v634_v38 }
 0x2d7   : > { %790 = vst.msk [vmem:[#allocation5 + $0x8] sm:$0xf] %vm787_vm13, %v757_v43  ;;  %v831_v43 = vpack.c.bf16 %v688_v41, %v649_v39 }
 0x2d8   : > { %825 = vst [vmem:[#allocation3 + $0x8] sm:$0xff] %v821_v42 }
 0x2d9   : > { %v1806_v44 = vpop.trf.xlu0  ;;  %835 = vst [vmem:[#allocation4 + $0x18] sm:$0xff] %v831_v43 }
 0x2da   : > { %v1810_v31 = vunpack.i.h.bf16 %v1806_v44  ;;  %v1807_v45 = vunpack.i.l.bf16 %v1806_v44 }
 0x2dc   : > { %v774_v47 = vpack.c.bf16 %v1810_v31, %v1810_v31  ;;  %v758_v48 = vpack.c.bf16 %v1807_v45, %v1807_v45 }
 0x2de   : > { %807 = vst.msk [vmem:[#allocation5 + $0x4c] sm:$0xf] %vm787_vm13, %v774_v47 }
 0x2df   : > { %791 = vst.msk [vmem:[#allocation5 + $0xc] sm:$0xf] %vm787_vm13, %v758_v48 }
 0x2e1   : > { %v1811_v49 = vpop.trf.xlu0 }
 0x2e2   : > { %v1815_v46 = vunpack.i.h.bf16 %v1811_v49  ;;  %v1812_v50 = vunpack.i.l.bf16 %v1811_v49  ;;  %v2105_v49 = vmov 1065369472  }
 0x2e3   : > { %836 = vst [vmem:[#allocation4 + $0x20] sm:$0x11] %v2105_v49 }
 0x2e4   : > { %v775_v51 = vpack.c.bf16 %v1815_v46, %v1815_v46  ;;  %v759_v52 = vpack.c.bf16 %v1812_v50, %v1812_v50 }
 0x2e6   : > { %808 = vst.msk [vmem:[#allocation5 + $0x50] sm:$0xf] %vm787_vm13, %v775_v51 }
 0x2e7   : > { %792 = vst.msk [vmem:[#allocation5 + $0x10] sm:$0xf] %vm787_vm13, %v759_v52 }
 0x2e9   : > { %v1816_v53 = vpop.trf.xlu0 }
 0x2ea   : > { %v1820_v54 = vunpack.i.h.bf16 %v1816_v53  ;;  %v1817_v25 = vunpack.i.l.bf16 %v1816_v53 }
 0x2ec   : > { %v776_v55 = vpack.c.bf16 %v1820_v54, %v1820_v54  ;;  %v760_v56 = vpack.c.bf16 %v1817_v25, %v1817_v25 }
 0x2ee   : > { %809 = vst.msk [vmem:[#allocation5 + $0x54] sm:$0xf] %vm787_vm13, %v776_v55 }
 0x2ef   : > { %793 = vst.msk [vmem:[#allocation5 + $0x14] sm:$0xf] %vm787_vm13, %v760_v56 }
 0x2f1   : > { %v1821_v60 = vpop.trf.xlu0 }
 0x2f2   : > { %v1825_v61 = vunpack.i.h.bf16 %v1821_v60  ;;  %v1822_v62 = vunpack.i.l.bf16 %v1821_v60 }
 0x2f4   : > { %v777_v0 = vpack.c.bf16 %v1825_v61, %v1825_v61  ;;  %v761_v1 = vpack.c.bf16 %v1822_v62, %v1822_v62 }
 0x2f6   : > { %810 = vst.msk [vmem:[#allocation5 + $0x58] sm:$0xf] %vm787_vm13, %v777_v0 }
 0x2f7   : > { %794 = vst.msk [vmem:[#allocation5 + $0x18] sm:$0xf] %vm787_vm13, %v761_v1 }
 0x2f9   : > { %v1826_v3 = vpop.trf.xlu0 }
 0x2fa   : > { %v1830_v7 = vunpack.i.h.bf16 %v1826_v3  ;;  %v1827_v8 = vunpack.i.l.bf16 %v1826_v3 }
 0x2fc   : > { %v778_v9 = vpack.c.bf16 %v1830_v7, %v1830_v7  ;;  %v762_v10 = vpack.c.bf16 %v1827_v8, %v1827_v8 }
 0x2fe   : > { %811 = vst.msk [vmem:[#allocation5 + $0x5c] sm:$0xf] %vm787_vm13, %v778_v9 }
 0x2ff   : > { %795 = vst.msk [vmem:[#allocation5 + $0x1c] sm:$0xf] %vm787_vm13, %v762_v10 }
 0x301   : > { %v1831_v6 = vpop.trf.xlu0 }
 0x302   : > { %v1835_v11 = vunpack.i.h.bf16 %v1831_v6  ;;  %v1832_v12 = vunpack.i.l.bf16 %v1831_v6 }
 0x304   : > { %v779_v13 = vpack.c.bf16 %v1835_v11, %v1835_v11  ;;  %v763_v14 = vpack.c.bf16 %v1832_v12, %v1832_v12 }
 0x306   : > { %812 = vst.msk [vmem:[#allocation5 + $0x60] sm:$0xf] %vm787_vm13, %v779_v13 }
 0x307   : > { %796 = vst.msk [vmem:[#allocation5 + $0x20] sm:$0xf] %vm787_vm13, %v763_v14 }
 0x309   : > { %v1836_v20 = vpop.trf.xlu0 }
 0x30a   : > { %v1840_v21 = vunpack.i.h.bf16 %v1836_v20  ;;  %v1837_v22 = vunpack.i.l.bf16 %v1836_v20 }
 0x30c   : > { %v780_v23 = vpack.c.bf16 %v1840_v21, %v1840_v21  ;;  %v764_v24 = vpack.c.bf16 %v1837_v22, %v1837_v22 }
 0x30e   : > { %813 = vst.msk [vmem:[#allocation5 + $0x64] sm:$0xf] %vm787_vm13, %v780_v23 }
 0x30f   : > { %797 = vst.msk [vmem:[#allocation5 + $0x24] sm:$0xf] %vm787_vm13, %v764_v24 }
 0x311   : > { %v1841_v33 = vpop.trf.xlu0 }
 0x312   : > { %v1845_v34 = vunpack.i.h.bf16 %v1841_v33  ;;  %v1842_v35 = vunpack.i.l.bf16 %v1841_v33 }
 0x314   : > { %v781_v36 = vpack.c.bf16 %v1845_v34, %v1845_v34  ;;  %v765_v37 = vpack.c.bf16 %v1842_v35, %v1842_v35 }
 0x316   : > { %814 = vst.msk [vmem:[#allocation5 + $0x68] sm:$0xf] %vm787_vm13, %v781_v36 }
 0x317   : > { %798 = vst.msk [vmem:[#allocation5 + $0x28] sm:$0xf] %vm787_vm13, %v765_v37 }
 0x319   : > { %v1846_v44 = vpop.trf.xlu0 }
 0x31a   : > { %v1850_v31 = vunpack.i.h.bf16 %v1846_v44  ;;  %v1847_v45 = vunpack.i.l.bf16 %v1846_v44 }
 0x31c   : > { %v782_v47 = vpack.c.bf16 %v1850_v31, %v1850_v31  ;;  %v766_v48 = vpack.c.bf16 %v1847_v45, %v1847_v45 }
 0x31e   : > { %815 = vst.msk [vmem:[#allocation5 + $0x6c] sm:$0xf] %vm787_vm13, %v782_v47 }
 0x31f   : > { %799 = vst.msk [vmem:[#allocation5 + $0x2c] sm:$0xf] %vm787_vm13, %v766_v48 }
 0x321   : > { %v1851_v46 = vpop.trf.xlu0 }
 0x322   : > { %v1855_v50 = vunpack.i.h.bf16 %v1851_v46  ;;  %v1852_v51 = vunpack.i.l.bf16 %v1851_v46 }
 0x324   : > { %v783_v52 = vpack.c.bf16 %v1855_v50, %v1855_v50  ;;  %v767_v53 = vpack.c.bf16 %v1852_v51, %v1852_v51 }
 0x326   : > { %816 = vst.msk [vmem:[#allocation5 + $0x70] sm:$0xf] %vm787_vm13, %v783_v52 }
 0x327   : > { %800 = vst.msk [vmem:[#allocation5 + $0x30] sm:$0xf] %vm787_vm13, %v767_v53 }
 0x329   : > { %v1856_v54 = vpop.trf.xlu0 }
 0x32a   : > { %v1860_v25 = vunpack.i.h.bf16 %v1856_v54  ;;  %v1857_v55 = vunpack.i.l.bf16 %v1856_v54 }
 0x32c   : > { %v784_v56 = vpack.c.bf16 %v1860_v25, %v1860_v25  ;;  %v768_v57 = vpack.c.bf16 %v1857_v55, %v1857_v55 }
 0x32e   : > { %817 = vst.msk [vmem:[#allocation5 + $0x74] sm:$0xf] %vm787_vm13, %v784_v56 }
 0x32f   : > { %801 = vst.msk [vmem:[#allocation5 + $0x34] sm:$0xf] %vm787_vm13, %v768_v57 }
 0x331   : > { %v1861_v58 = vpop.trf.xlu0 }
 0x332   : > { %v1865_v59 = vunpack.i.h.bf16 %v1861_v58  ;;  %v1862_v60 = vunpack.i.l.bf16 %v1861_v58 }
 0x334   : > { %v785_v61 = vpack.c.bf16 %v1865_v59, %v1865_v59  ;;  %v769_v62 = vpack.c.bf16 %v1862_v60, %v1862_v60 }
 0x336   : > { %818 = vst.msk [vmem:[#allocation5 + $0x78] sm:$0xf] %vm787_vm13, %v785_v61 }
 0x337   : > { %802 = vst.msk [vmem:[#allocation5 + $0x38] sm:$0xf] %vm787_vm13, %v769_v62 }
 0x339   : > { %v1866_v0 = vpop.trf.xlu0 }
 0x33a   : > { %v1870_v1 = vunpack.i.h.bf16 %v1866_v0  ;;  %v1867_v63 = vunpack.i.l.bf16 %v1866_v0 }
 0x33c   : > { %v786_v18 = vpack.c.bf16 %v1870_v1, %v1870_v1  ;;  %v770_v19 = vpack.c.bf16 %v1867_v63, %v1867_v63 }
 0x33e   : > { %819 = vst.msk [vmem:[#allocation5 + $0x7c] sm:$0xf] %vm787_vm13, %v786_v18 }
 0x33f   : > { %803 = vst.msk [vmem:[#allocation5 + $0x3c] sm:$0xf] %vm787_vm13, %v770_v19 }
 0x340 PF: > { %v1568_v3 = vld [vmem:[#allocation3 + $0x10] sm:$0xf]  ;;  %v1640_v7 = vld [vmem:[#allocation3 + $0x14] sm:$0xf0]  ;;  %v1639_v8 = vld [vmem:[#allocation3 + $0x14] sm:$0xf] }
 0x341   : > { %v1569_v9 = vor.u32 %v1640_v7, %v1568_v3  ;;  %v1570_v10 = vld [vmem:[#allocation3 + $0x18] sm:$0xf0]  ;;  %v1560_v5 = vld [vmem:[#allocation3] sm:$0xf]  ;;  %v1638_v2 = vld [vmem:[#allocation3 + $0x4] sm:$0xf0] }
 0x342   : > { %v1573_v4 = vor.u32 %v1639_v8, %v1570_v10  ;;  %v1637_v6 = vld [vmem:[#allocation3 + $0x4] sm:$0xf]  ;;  %v1562_v11 = vld [vmem:[#allocation3 + $0x8] sm:$0xf0]  ;;  %s1524_s30 = sshll.u32 %s2084_s27, 7  ;;  %v1561_v12 = vor.u32 %v1638_v2, %v1560_v5  ;;  %vm922_vm14 = vcmask 261120  }
 0x343   : > { %953 = vmatpush.bf16.msra.mxu0 %v1569_v9  ;;  %s838_s16 = sshra.s32 %s1524_s30, 3  ;;  %v1565_v13 = vor.u32 %v1637_v6, %v1562_v11  ;;  %s1354_s18 = sshra.s32 %s1524_s30, 7 }
 0x344   : > { %1002 = vmatpush.bf16.msra.mxu1 %v1573_v4  ;;  %s1525_s20 = sshll.u32 %s838_s16, 2  ;;  %s1616_s12 = sshll.u32 %s1354_s18, 3 }
 0x345   : > { %s841_s24 = scalar_lea.vmem [#allocation5], %s1525_s20  ;;  %s1618_s9 = sshll.u32 %s2088_s28, 3 }
 0x346   : > { %v1629_v14 = vld [vmem:[%s841_s24] sm:$0xff]  ;;  %v1630_v15 = vld [vmem:[%s841_s24 + $0x8] sm:$0xff]  ;;  %v1631_v16 = vld [vmem:[%s841_s24 + $0x10] sm:$0xff]  ;;  %s1357_s15 = scalar_lea.vmem %s2254_s14, %s1616_s12 [#allocation6]  ;;  %s1381_s11 = sadd.s32 %s2084_s27, %s1618_s9 }
 0x347   : > { %954 = vmatpush.bf16.msra.mxu0 %v1561_v12  ;;  %v1632_v17 = vld [vmem:[%s841_s24 + $0x18] sm:$0xff]  ;;  %v1633_v20 = vld [vmem:[%s841_s24 + $0x20] sm:$0xff]  ;;  %v1634_v21 = vld [vmem:[%s841_s24 + $0x28] sm:$0xff]  ;;  %s1619_s17 = sshll.u32 %s1381_s11, 3  ;;  %s1384_s27 = sshll.u32 %s2263_s19, 4  ;;  %s1385_s27 = int_to_ptr.vmem [resolvable:$true] %s1384_s27 }
 0x348   : > { %1003 = vmatpush.bf16.msra.mxu1 %v1565_v13  ;;  %v1635_v22 = vld [vmem:[%s841_s24 + $0x30] sm:$0xff]  ;;  %v1636_v23 = vld [vmem:[%s841_s24 + $0x38] sm:$0xff]  ;;  %s1383_s28 = scalar_lea.hbm %s2631_s6, %s1619_s17  ;;  %s1371_s20 = scalar_lea.sflag [#allocation8], %s283_s29 }
 0x349   : > { %s1386_s16 = sshll.u32 %s1383_s28, 4  ;;  %s1998_s9 = scalar_lea.hbm %s2631_s6, 128  ;;  %s1387_s16 = int_to_ptr.hbm [resolvable:$true] %s1386_s16 }
 0x34a   : > { %1574 = vmatmul.msk.bf16.vlgmr.msra.gmra.mxu0 %vm922_vm14, %v1629_v14  ;;  %s1992_s24 = sshra.s32 %s1387_s16, 4  ;;  %s1993_s24 = int_to_ptr.hbm [resolvable:$true] %s1992_s24 }
 0x34b   : > { %1582 = vmatmul.msk.bf16.vlgmr.msra.gmra.mxu1 %vm922_vm14, %v1629_v14  ;;  %s1994_s8 = scalar_lea.hbm %s1993_s24, 32  ;;  %p1999_p11 = scmp.lt.s32.totalorder %s1993_s24, %s2631_s6 }
 0x34c   : > { %p1995_p7 = scmp.ne.s32.totalorder %s1993_s24, %s1994_s8  ;;  %p2000_p13 = scmp.lt.s32.totalorder %s1998_s9, %s1994_s8 }
 0x34e   : > { %p1996_p9 = pnand %p1995_p7, %p2227_p12  ;;  %p2001_p0 = por %p2000_p13, %p1999_p11 }
 0x350   : > { %p1997_p10 = pneg %p1996_p9 }
 0x352   : > { %p2002_p1 = pnand %p2001_p0, %p1997_p10 }
 0x35a   : > { %1575 = vmatmul.msk.bf16.gmra.mxu0 %vm922_vm14, %v1630_v15 }
 0x35b   : > { %1583 = vmatmul.msk.bf16.gmra.mxu1 %vm922_vm14, %v1630_v15 }
 0x36a   : > { %1576 = vmatmul.msk.bf16.gmra.mxu0 %vm922_vm14, %v1631_v16 }
 0x36b   : > { %1584 = vmatmul.msk.bf16.gmra.mxu1 %vm922_vm14, %v1631_v16 }
 0x37a   : > { %1577 = vmatmul.msk.bf16.gmra.mxu0 %vm922_vm14, %v1632_v17 }
 0x37b   : > { %1585 = vmatmul.msk.bf16.gmra.mxu1 %vm922_vm14, %v1632_v17 }
 0x38a   : > { %1578 = vmatmul.msk.bf16.gmra.mxu0 %vm922_vm14, %v1633_v20 }
 0x38b   : > { %1586 = vmatmul.msk.bf16.gmra.mxu1 %vm922_vm14, %v1633_v20 }
 0x39a   : > { %1579 = vmatmul.msk.bf16.gmra.mxu0 %vm922_vm14, %v1634_v21 }
 0x39b   : > { %1587 = vmatmul.msk.bf16.gmra.mxu1 %vm922_vm14, %v1634_v21 }
 0x3aa   : > { %1580 = vmatmul.msk.bf16.gmra.mxu0 %vm922_vm14, %v1635_v22 }
 0x3ab   : > { %1588 = vmatmul.msk.bf16.gmra.mxu1 %vm922_vm14, %v1635_v22 }
 0x3ba   : > { %1581 = vmatmul.msk.bf16.gmra.mxu0 %vm922_vm14, %v1636_v23 }
 0x3bb   : > { %1589 = vmatmul.msk.bf16.gmra.mxu1 %vm922_vm14, %v1636_v23 }
 0x3c7   : > { %v2447_v24 = vpop.f32.mrf.mxu0 }
 0x3c8   : > { %v2449_v26 = vpop.f32.mrf.mxu1 }
 0x3c9   : > { %v1045_v60 = vmax.f32 %v2447_v24, %v2449_v26 }
 0x3cf   : > { %v2451_v27 = vpop.f32.mrf.mxu0 }
 0x3d0   : > { %v2453_v28 = vpop.f32.mrf.mxu1 }
 0x3d1   : > { %v1048_v9 = vmax.f32 %v2451_v27, %v2453_v28 }
 0x3d7   : > { %v2455_v29 = vpop.f32.mrf.mxu0 }
 0x3d8   : > { %v2457_v30 = vpop.f32.mrf.mxu1 }
 0x3d9   : > { %v1051_v8 = vmax.f32 %v2455_v29, %v2457_v30 }
 0x3df   : > { %v2459_v32 = vpop.f32.mrf.mxu0 }
 0x3e0   : > { %v2461_v33 = vpop.f32.mrf.mxu1 }
 0x3e1   : > { %v1054_v19 = vmax.f32 %v2459_v32, %v2461_v33 }
 0x3e7   : > { %v2463_v34 = vpop.f32.mrf.mxu0 }
 0x3e8   : > { %v2465_v35 = vpop.f32.mrf.mxu1 }
 0x3e9   : > { %v1057_v18 = vmax.f32 %v2463_v34, %v2465_v35 }
 0x3ef   : > { %v2467_v36 = vpop.f32.mrf.mxu0 }
 0x3f0   : > { %v2469_v37 = vpop.f32.mrf.mxu1 }
 0x3f1   : > { %v1060_v56 = vmax.f32 %v2467_v36, %v2469_v37 }
 0x3f7   : > { %v2471_v38 = vpop.f32.mrf.mxu0 }
 0x3f8   : > { %v2473_v39 = vpop.f32.mrf.mxu1 }
 0x3f9   : > { %v1063_v53 = vmax.f32 %v2471_v38, %v2473_v39 }
 0x3ff   : > { %v2475_v40 = vpop.f32.mrf.mxu0 }
 0x400   : > { %v2477_v41 = vpop.f32.mrf.mxu1 }
 0x401   : > { %v1066_v7 = vmax.f32 %v2475_v40, %v2477_v41 }
 0x407   : > { %v2479_v42 = vpop.f32.mrf.mxu0 }
 0x408   : > { %v2481_v43 = vpop.f32.mrf.mxu1 }
 0x409   : > { %v1069_v3 = vmax.f32 %v2479_v42, %v2481_v43 }
 0x40f   : > { %v2483_v44 = vpop.f32.mrf.mxu0 }
 0x410   : > { %v2485_v31 = vpop.f32.mrf.mxu1 }
 0x411   : > { %v1072_v61 = vmax.f32 %v2483_v44, %v2485_v31 }
 0x417   : > { %v2487_v45 = vpop.f32.mrf.mxu0 }
 0x418   : > { %v2489_v47 = vpop.f32.mrf.mxu1 }
 0x419   : > { %v1075_v48 = vmax.f32 %v2487_v45, %v2489_v47 }
 0x41b   : > { %1076 = vmax.xlane.f32.xlu2 %v1075_v48 }
 0x41f   : > { %v2493_v49 = vpop.f32.mrf.mxu0 }
 0x420   : > { %v2495_v46 = vpop.f32.mrf.mxu1 }
 0x421   : > { %v1078_v50 = vmax.f32 %v2493_v49, %v2495_v46 }
 0x423   : > { %1079 = vmax.xlane.f32.xlu2 %v1078_v50 }
 0x427   : > { %v986_v51 = vpop.f32.mrf.mxu0 }
 0x428   : > { %v1035_v52 = vpop.f32.mrf.mxu1 }
 0x429   : > { %v1081_v54 = vmax.f32 %v986_v51, %v1035_v52 }
 0x42b   : > { %1064 = vmax.xlane.f32.xlu2 %v1063_v53  ;;  %1082 = vmax.xlane.f32.xlu1 %v1081_v54 }
 0x42f   : > { %v988_v25 = vpop.f32.mrf.mxu0 }
 0x430   : > { %v1037_v55 = vpop.f32.mrf.mxu1 }
 0x431   : > { %v1084_v57 = vmax.f32 %v988_v25, %v1037_v55 }
 0x433   : > { %1061 = vmax.xlane.f32.xlu2 %v1060_v56  ;;  %1085 = vmax.xlane.f32.xlu1 %v1084_v57 }
 0x437   : > { %v991_v58 = vpop.f32.mrf.mxu0 }
 0x438   : > { %v1040_v59 = vpop.f32.mrf.mxu1 }
 0x439   : > { %v1087_v62 = vmax.f32 %v991_v58, %v1040_v59 }
 0x43b   : > { %1046 = vmax.xlane.f32.xlu2 %v1045_v60  ;;  %1073 = vmax.xlane.f32.xlu1 %v1072_v61 }
 0x43c   : > { %1088 = vmax.xlane.f32.xlu0 %v1087_v62 }
 0x43f   : > { %v993_v0 = vpop.f32.mrf.mxu0 }
 0x440   : > { %v1042_v1 = vpop.f32.mrf.mxu1 }
 0x441   : > { %v1090_v63 = vmax.f32 %v993_v0, %v1042_v1 }
 0x443   : > { %1058 = vmax.xlane.f32.xlu1 %v1057_v18 }
 0x444   : > { %1091 = vmax.xlane.f32.xlu0 %v1090_v63 }
 0x44b   : > { %1055 = vmax.xlane.f32.xlu1 %v1054_v19 }
 0x44c   : > { %1070 = vmax.xlane.f32.xlu0 %v1069_v3 }
 0x454   : > { %1067 = vmax.xlane.f32.xlu0 %v1066_v7 }
 0x45c   : > { %1052 = vmax.xlane.f32.xlu0 %v1051_v8 }
 0x464   : > { %1049 = vmax.xlane.f32.xlu0 %v1048_v9 }
 0x48e   : > { %v1077_v6 = vpop.xlane.xlu2 %1076 }
 0x496   : > { %v1080_v53 = vpop.xlane.xlu2 %1079 }
 0x497   : > { %v1115_v61 = vsub.f32 %v2493_v49, %v1080_v53 }
 0x499   : > { %v1169_v63 = vmul.f32 1.442695, %v1115_v61 }
 0x49e   : > { %v1083_v10 = vpop.xlane.xlu1 %1082 }
 0x49f   : > { %v1117_v23 = vsub.f32 %v986_v51, %v1083_v10  ;;  %v1118_v48 = vsub.f32 %v1035_v52, %v1083_v10  ;;  %v1113_v51 = vsub.f32 %v2487_v45, %v1077_v6 }
 0x4a1   : > { %v1173_v57 = vmul.f32 1.442695, %v1117_v23  ;;  %v1165_v49 = vmul.f32 1.442695, %v1113_v51 }
 0x4a6   : > { %v1086_v13 = vpop.xlane.xlu1 %1085 }
 0x4a7   : > { %v1119_v21 = vsub.f32 %v988_v25, %v1086_v13  ;;  %v1120_v22 = vsub.f32 %v1037_v55, %v1086_v13  ;;  %v1116_v25 = vsub.f32 %v2495_v46, %v1080_v53 }
 0x4a9   : > { %v1177_v50 = vmul.f32 1.442695, %v1119_v21  ;;  %v1179_v54 = vmul.f32 1.442695, %v1120_v22  ;;  %v1171_v18 = vmul.f32 1.442695, %v1116_v25 }
 0x4ae   : > { %v1074_v8 = vpop.xlane.xlu1 %1073 }
 0x4af   : > { %v1089_v5 = vpop.xlane.xlu0 %1088 }
 0x4b0   : > { %v1121_v2 = vsub.f32 %v991_v58, %v1089_v5  ;;  %v1122_v4 = vsub.f32 %v1040_v59, %v1089_v5  ;;  %v1175_v59 = vmul.f32 1.442695, %v1118_v48  ;;  %v1111_v5 = vsub.f32 %v2483_v44, %v1074_v8 }
 0x4b2   : > { %v1181_v11 = vmul.f32 1.442695, %v1121_v2  ;;  %v1183_v14 = vmul.f32 1.442695, %v1122_v4  ;;  %v1112_v4 = vsub.f32 %v2485_v31, %v1074_v8 }
 0x4b4   : > { %1882 = vpow2.f32 %v1181_v11  ;;  %v1065_v11 = vpop.xlane.xlu2 %1064 }
 0x4b5   : > { %1884 = vpow2.f32 %v1183_v14  ;;  %v1105_v31 = vsub.f32 %v2471_v38, %v1065_v11  ;;  %v1106_v23 = vsub.f32 %v2473_v39, %v1065_v11 }
 0x4b7   : > { %v1092_v12 = vpop.xlane.xlu0 %1091 }
 0x4b8   : > { %v1123_v15 = vsub.f32 %v993_v0, %v1092_v12  ;;  %v1124_v16 = vsub.f32 %v1042_v1, %v1092_v12  ;;  %v1114_v0 = vsub.f32 %v2489_v47, %v1077_v6 }
 0x4ba   : > { %v1185_v17 = vmul.f32 1.442695, %v1123_v15  ;;  %v1187_v20 = vmul.f32 1.442695, %v1124_v16  ;;  %v1883_v56 = vpop.eup %1882  ;;  %v1167_v7 = vmul.f32 1.442695, %v1114_v0 }
 0x4bb   : > { %v1885_v58 = vpop.eup %1884  ;;  %v1163_v16 = vmul.f32 1.442695, %v1112_v4 }
 0x4bc   : > { %1886 = vpow2.f32 %v1185_v17 }
 0x4bd   : > { %1888 = vpow2.f32 %v1187_v20 }
 0x4be   : > { %1890 = vpow2.f32 %v1177_v50  ;;  %v1059_v50 = vpop.xlane.xlu1 %1058 }
 0x4bf   : > { %1892 = vpow2.f32 %v1179_v54  ;;  %v1071_v1 = vpop.xlane.xlu0 %1070 }
 0x4c0   : > { %1894 = vpow2.f32 %v1173_v57  ;;  %v1109_v9 = vsub.f32 %v2479_v42, %v1071_v1  ;;  %v1110_v10 = vsub.f32 %v2481_v43, %v1071_v1  ;;  %v1161_v42 = vmul.f32 1.442695, %v1111_v5 }
 0x4c1   : > { %1896 = vpow2.f32 %v1175_v59  ;;  %v1151_v57 = vmul.f32 1.442695, %v1106_v23 }
 0x4c2   : > { %v1887_v60 = vpop.eup %1886  ;;  %1898 = vpow2.f32 %v1169_v63  ;;  %v1157_v6 = vmul.f32 1.442695, %v1109_v9  ;;  %v1159_v12 = vmul.f32 1.442695, %v1110_v10 }
 0x4c3   : > { %v1889_v62 = vpop.eup %1888  ;;  %v1208_v55 = vpack.c.bf16 %v1887_v60, %v1883_v56  ;;  %1900 = vpow2.f32 %v1171_v18  ;;  %v1149_v56 = vmul.f32 1.442695, %v1105_v31  ;;  %v1102_v60 = vsub.f32 %v2465_v35, %v1059_v50 }
 0x4c4   : > { %v1209_v52 = vpack.c.bf16 %v1889_v62, %v1885_v58  ;;  %v1891_v19 = vpop.eup %1890  ;;  %1902 = vpow2.f32 %v1165_v49  ;;  %v1062_v58 = vpop.xlane.xlu2 %1061 }
 0x4c5   : > { %1237 = vmatpush.bf16.xpose.msra.mxu2 %v1208_v55  ;;  %v1893_v3 = vpop.eup %1892  ;;  %1904 = vpow2.f32 %v1167_v7  ;;  %v1103_v61 = vsub.f32 %v2467_v36, %v1062_v58  ;;  %v1104_v25 = vsub.f32 %v2469_v37, %v1062_v58  ;;  %v1644_v58 = vld [vmem:[#allocation4 + $0x14] sm:$0xf0] }
 0x4c6   : > { %1260 = vmatpush.bf16.xpose.msra.mxu3 %v1209_v52  ;;  %v1895_v46 = vpop.eup %1894  ;;  %1906 = vpow2.f32 %v1157_v6  ;;  %v1143_v52 = vmul.f32 1.442695, %v1102_v60  ;;  %v1056_v18 = vpop.xlane.xlu1 %1055 }
 0x4c7   : > { %v1897_v45 = vpop.eup %1896  ;;  %v1206_v47 = vpack.c.bf16 %v1891_v19, %v1895_v46  ;;  %v1068_v13 = vpop.xlane.xlu0 %1067  ;;  %1908 = vpow2.f32 %v1159_v12  ;;  %v1147_v63 = vmul.f32 1.442695, %v1104_v25  ;;  %v1099_v37 = vsub.f32 %v2459_v32, %v1056_v18 }
 0x4c8   : > { %v1207_v2 = vpack.c.bf16 %v1893_v3, %v1897_v45  ;;  %v1899_v14 = vpop.eup %1898  ;;  %v1107_v43 = vsub.f32 %v2475_v40, %v1068_v13  ;;  %v1108_v44 = vsub.f32 %v2477_v41, %v1068_v13  ;;  %1910 = vpow2.f32 %v1161_v42 }
 0x4c9   : > { %v1901_v15 = vpop.eup %1900  ;;  %1912 = vpow2.f32 %v1163_v16  ;;  %v1101_v41 = vsub.f32 %v2463_v34, %v1059_v50  ;;  %v1145_v34 = vmul.f32 1.442695, %v1103_v61  ;;  %v1100_v8 = vsub.f32 %v2461_v33, %v1056_v18  ;;  %v1642_v50 = vld [vmem:[#allocation4 + $0x4] sm:$0xf0] }
 0x4ca   : > { %v1903_v17 = vpop.eup %1902  ;;  %v1153_v48 = vmul.f32 1.442695, %v1107_v43  ;;  %v1155_v53 = vmul.f32 1.442695, %v1108_v44 }
 0x4cb   : > { %v1905_v20 = vpop.eup %1904  ;;  %v1204_v21 = vpack.c.bf16 %v1899_v14, %v1903_v17  ;;  %v1141_v51 = vmul.f32 1.442695, %v1101_v41  ;;  %v1602_v41 = vld [vmem:[#allocation4 + $0x18] sm:$0xf0] }
 0x4cc   : > { %v1205_v22 = vpack.c.bf16 %v1901_v15, %v1905_v20  ;;  %v1907_v54 = vpop.eup %1906  ;;  %1914 = vpow2.f32 %v1153_v48  ;;  %v1047_v5 = vpop.xlane.xlu2 %1046  ;;  %v1592_v48 = vld [vmem:[#allocation4] sm:$0xf] }
 0x4cd   : > { %1238 = vmatpush.bf16.xpose.msra.mxu2 %v1206_v47  ;;  %v1909_v40 = vpop.eup %1908  ;;  %1916 = vpow2.f32 %v1155_v53  ;;  %v1137_v47 = vmul.f32 1.442695, %v1099_v37  ;;  %v1093_v33 = vsub.f32 %v2447_v24, %v1047_v5  ;;  %v1094_v13 = vsub.f32 %v2449_v26, %v1047_v5  ;;  %v1641_v53 = vld [vmem:[#allocation4 + $0x4] sm:$0xf] }
 0x4ce   : > { %1261 = vmatpush.bf16.xpose.msra.mxu3 %v1207_v2  ;;  %v1911_v59 = vpop.eup %1910  ;;  %1918 = vpow2.f32 %v1149_v56  ;;  %v1139_v2 = vmul.f32 1.442695, %v1100_v8  ;;  %v1593_v56 = vor.u32 %v1642_v50, %v1592_v48  ;;  %v1298_v8 = vld [vmem:[%s2630_s5 + $0x18] sm:$0xff]  ;;  %v1361_v48 = vld [vmem:[%s1357_s15 + $0x30] sm:$0xff] }
 0x4cf   : > { %v1913_v38 = vpop.eup %1912  ;;  %v1202_v39 = vpack.c.bf16 %v1911_v59, %v1907_v54  ;;  %1920 = vpow2.f32 %v1151_v57  ;;  %v1053_v55 = vpop.xlane.xlu0 %1052  ;;  %v1125_v16 = vmul.f32 1.442695, %v1093_v33  ;;  %v1594_v54 = vld [vmem:[#allocation4 + $0x8] sm:$0xf0]  ;;  %v1600_v57 = vld [vmem:[#allocation4 + $0x10] sm:$0xf] }
 0x4d0   : > { %v1203_v62 = vpack.c.bf16 %v1913_v38, %v1909_v40  ;;  %1922 = vpow2.f32 %v1141_v51  ;;  %v1097_v19 = vsub.f32 %v2455_v29, %v1053_v55  ;;  %v1098_v36 = vsub.f32 %v2457_v30, %v1053_v55  ;;  %v1643_v59 = vld [vmem:[#allocation4 + $0x14] sm:$0xf] }
 0x4d1   : > { %1924 = vpow2.f32 %v1143_v52  ;;  %v1597_v40 = vor.u32 %v1641_v53, %v1594_v54  ;;  %v1601_v38 = vor.u32 %v1644_v58, %v1600_v57  ;;  %v1605_v60 = vor.u32 %v1643_v59, %v1602_v41 }
 0x4d2   : > { %v1915_v0 = vpop.eup %1914  ;;  %1926 = vpow2.f32 %v1145_v34  ;;  %v1133_v46 = vmul.f32 1.442695, %v1097_v19  ;;  %v1135_v9 = vmul.f32 1.442695, %v1098_v36  ;;  %v1297_v19 = vld [vmem:[%s2630_s5 + $0x10] sm:$0xff]  ;;  %v2106_v36 = vmov 0  }
 0x4d3   : > { %v1917_v1 = vpop.eup %1916  ;;  %1928 = vpow2.f32 %v1147_v63  ;;  %1881 = vset.pattern.permute.xlu0 %v2106_v36  ;;  %1879 = vset.pattern.permute.xlu1 %v2106_v36 }
 0x4d4   : > { %v1919_v35 = vpop.eup %1918  ;;  %1930 = vpow2.f32 %v1133_v46  ;;  %1311 = vperm.xlu0 %1881, %v1297_v19   ;;  %1880 = vset.pattern.permute.xlu2 %v2106_v36 }
 0x4d5   : > { %1239 = vmatpush.bf16.xpose.msra.mxu2 %v1204_v21  ;;  %v1921_v49 = vpop.eup %1920  ;;  %v1200_v3 = vpack.c.bf16 %v1915_v0, %v1919_v35  ;;  %1932 = vpow2.f32 %v1135_v9  ;;  %v1295_v35 = vld [vmem:[%s2630_s5] sm:$0xff] }
 0x4d6   : > { %1262 = vmatpush.bf16.xpose.msra.mxu3 %v1205_v22  ;;  %v1201_v7 = vpack.c.bf16 %v1917_v1, %v1921_v49  ;;  %v1923_v10 = vpop.eup %1922  ;;  %1934 = vpow2.f32 %v1137_v47  ;;  %1301 = vperm.xlu1 %1879, %v1295_v35  }
 0x4d7   : > { %v1050_v45 = vpop.xlane.xlu0 %1049  ;;  %v1925_v29 = vpop.eup %1924  ;;  %1936 = vpow2.f32 %v1139_v2 }
 0x4d8   : > { %v1927_v4 = vpop.eup %1926  ;;  %v1095_v30 = vsub.f32 %v2451_v27, %v1050_v45  ;;  %v1096_v32 = vsub.f32 %v2453_v28, %v1050_v45  ;;  %v1127_v27 = vmul.f32 1.442695, %v1094_v13  ;;  %v1645_v13 = vld [vmem:[%s2629_s4] sm:$0xff] }
 0x4d9   : > { %v1929_v6 = vpop.eup %1928  ;;  %v1198_v11 = vpack.c.bf16 %v1927_v4, %v1923_v10 }
 0x4da   : > { %v1199_v12 = vpack.c.bf16 %v1929_v6, %v1925_v29  ;;  %v1129_v14 = vmul.f32 1.442695, %v1095_v30  ;;  %v1131_v42 = vmul.f32 1.442695, %v1096_v32  ;;  %v1931_v15 = vpop.eup %1930 }
 0x4db   : > { %v1933_v17 = vpop.eup %1932 }
 0x4dc   : > { %v1935_v43 = vpop.eup %1934  ;;  %1938 = vpow2.f32 %v1129_v14  ;;  %v1646_v14 = vld [vmem:[%s2629_s4 + $0x8] sm:$0xff] }
 0x4dd   : > { %1240 = vmatpush.bf16.xpose.msra.mxu2 %v1202_v39  ;;  %v1937_v20 = vpop.eup %1936  ;;  %1940 = vpow2.f32 %v1131_v42  ;;  %v1196_v28 = vpack.c.bf16 %v1935_v43, %v1931_v15  ;;  %v1193_v39 = vld [vmem:[#allocation4 + $0x20] sm:$0x11] }
 0x4de   : > { %1263 = vmatpush.bf16.xpose.msra.mxu3 %v1203_v62  ;;  %1942 = vpow2.f32 %v1125_v16  ;;  %v1197_v24 = vpack.c.bf16 %v1937_v20, %v1933_v17  ;;  %v1223_v61 = vunpack.c.l.b16 %v1193_v39  ;;  %v1224_v62 = vunpack.c.h.b16 %v1193_v39  ;;  %v1358_v43 = vld [vmem:[%s1357_s15] sm:$0xff] }
 0x4df   : > { %1944 = vpow2.f32 %v1127_v27  ;;  %v1360_v20 = vld [vmem:[%s1357_s15 + $0x20] sm:$0xff] }
 0x4e0   : > { %v1229_v25 = vpack.c.b16 %v1223_v61, %v1223_v61  ;;  %v1230_v55 = vpack.c.b16 %v1224_v62, %v1224_v62 }
 0x4e2   : > { %v1939_v26 = vpop.eup %1938 }
 0x4e3   : > { %v1941_v44 = vpop.eup %1940 }
 0x4e4   : > { %v1943_v21 = vpop.eup %1942 }
 0x4e5   : > { %1241 = vmatpush.bf16.xpose.msra.mxu2 %v1200_v3  ;;  %v1945_v31 = vpop.eup %1944  ;;  %v1194_v22 = vpack.c.bf16 %v1939_v26, %v1943_v21  ;;  %v1296_v3 = vld [vmem:[%s2630_s5 + $0x8] sm:$0xff] }
 0x4e6   : > { %1264 = vmatpush.bf16.xpose.msra.mxu3 %v1201_v7  ;;  %v1195_v23 = vpack.c.bf16 %v1941_v44, %v1945_v31  ;;  %1306 = vperm.xlu2 %1880, %v1296_v3  }
 0x4ed   : > { %1242 = vmatpush.bf16.xpose.msra.mxu2 %v1198_v11 }
 0x4ee   : > { %1265 = vmatpush.bf16.xpose.msra.mxu3 %v1199_v12  ;;  %1316 = vperm.xlu2 %1880, %v1298_v8  }
 0x4f5   : > { %1243 = vmatpush.bf16.xpose.msra.mxu2 %v1196_v28 }
 0x4f6   : > { %1266 = vmatpush.bf16.xpose.msra.mxu3 %v1197_v24 }
 0x4fd   : > { %1244 = vmatpush.bf16.xpose.msra.mxu2 %v1194_v22  ;;  %v1359_v22 = vld [vmem:[%s1357_s15 + $0x10] sm:$0xff] }
 0x4fe   : > { %1267 = vmatpush.bf16.xpose.msra.mxu3 %v1195_v23 }
 0x504   : > { %1245 = vmatmul.bf16.vlgmr.msra.gmra.mxu2 %v1593_v56 }
 0x505   : > { %1268 = vmatmul.bf16.vlgmr.msra.gmra.mxu3 %v1597_v40 }
 0x514   : > { %1250 = vmatmul.bf16.gmra.mxu2 %v1601_v38 }
 0x515   : > { %1273 = vmatmul.bf16.gmra.mxu3 %v1605_v60 }
 0x524   : > { %1255 = vmatmul.bf16.gmra.mxu2 %v1229_v25 }
 0x525   : > { %1278 = vmatmul.bf16.gmra.mxu3 %v1230_v55 }
 0x540   : > { %v1307_v42 = vpop.permute.xlu2 %1306 }
 0x546   : > { %v1312_v16 = vpop.permute.xlu0 %1311 }
 0x548   : > { %v1302_v15 = vpop.permute.xlu1 %1301  ;;  %v1317_v21 = vpop.permute.xlu2 %1316 }
 0x587   : > { %v1246_v51 = vpop.f32.mrf.mxu2 }
 0x588   : > { %v1269_v52 = vpop.f32.mrf.mxu3 }
 0x589   : > { %v1270_v2 = vadd.f32 %v1269_v52, %v1246_v51 }
 0x58f   : > { %v1248_v0 = vpop.f32.mrf.mxu2 }
 0x590   : > { %v1271_v34 = vpop.f32.mrf.mxu3 }
 0x591   : > { %v1272_v4 = vadd.f32 %v1271_v34, %v1248_v0 }
 0x597   : > { %v1251_v1 = vpop.f32.mrf.mxu2 }
 0x598   : > { %v1274_v63 = vpop.f32.mrf.mxu3 }
 0x599   : > { %v1275_v47 = vadd.f32 %v1274_v63, %v1251_v1 }
 0x59f   : > { %v1253_v18 = vpop.f32.mrf.mxu2 }
 0x5a0   : > { %v1276_v49 = vpop.f32.mrf.mxu3 }
 0x5a1   : > { %v1277_v29 = vadd.f32 %v1276_v49, %v1253_v18 }
 0x5a7   : > { %v1256_v37 = vpop.f32.mrf.mxu2 }
 0x5a8   : > { %v1279_v7 = vpop.f32.mrf.mxu3 }
 0x5a9   : > { %v1280_v46 = vadd.f32 %v1279_v7, %v1256_v37 }
 0x5ab   : > { %1946 = vrcp.f32 %v1280_v46 }
 0x5af   : > { %v1258_v9 = vpop.f32.mrf.mxu2 }
 0x5b0   : > { %v1281_v45 = vpop.f32.mrf.mxu3 }
 0x5b1   : > { %v1947_v10 = vpop.eup %1946 }
 0x5b2   : > { %v1284_v5 = vperm.slane %v1947_v10, 0 }
 0x5b4   : > { %v1287_v30 = vmul.f32 %v1284_v5, %v1275_v47  ;;  %v1288_v6 = vmul.f32 %v1284_v5, %v1277_v29  ;;  %v1285_v11 = vmul.f32 %v1284_v5, %v1270_v2  ;;  %v1286_v33 = vmul.f32 %v1284_v5, %v1272_v4 }
 0x5b6   : > { %v1294_v32 = vpack.c.bf16 %v1288_v6, %v1287_v30  ;;  %v1293_v12 = vpack.c.bf16 %v1286_v33, %v1285_v11 }
 0x5b8   : > { %1341 = vmatpush.bf16.msrb.mxu2 %v1294_v32  ;;  %1651 = vmatpush.bf16.msrb.mxu3 %v1294_v32 }
 0x5bc   : > { %1342 = vmatpush.bf16.msrb.mxu2 %v1293_v12  ;;  %1652 = vmatpush.bf16.msrb.mxu3 %v1293_v12 }
 0x5bf   : > { %1614 = vmatmul.msk.bf16.vlgmr.msrb.gmra.mxu2 %vm922_vm14, %v1645_v13  ;;  %1615 = vmatmul.msk.bf16.vlgmr.msrb.gmra.mxu3 %vm922_vm14, %v1646_v14 }
 0x642   : > { %v1344_v17 = vpop.f32.mrf.mxu2  ;;  %v1349_v27 = vpop.f32.mrf.mxu3 }
 0x643   : > { %v1345_v28 = vadd.f32 %v1344_v17, %v1302_v15  ;;  %v1350_v24 = vadd.f32 %v1349_v27, %v1312_v16 }
 0x645   : > { %v1362_v26 = vadd.f32 %v1358_v43, %v1345_v28  ;;  %v1364_v44 = vadd.f32 %v1360_v20, %v1350_v24 }
 0x647   : > { %1366 = vst [vmem:[%s2263_s19] sm:$0xff] %v1362_v26 }
 0x648   : > { %1368 = vst [vmem:[%s2263_s19 + $0x10] sm:$0xff] %v1364_v44 }
 0x64a   : > { %v1346_v31 = vpop.f32.mrf.mxu2  ;;  %v1351_v23 = vpop.f32.mrf.mxu3 }
 0x64b   : > { %v1347_v50 = vadd.f32 %v1346_v31, %v1307_v42  ;;  %v1352_v53 = vadd.f32 %v1351_v23, %v1317_v21 }
 0x64d   : > { %v1363_v54 = vadd.f32 %v1359_v22, %v1347_v50  ;;  %v1365_v56 = vadd.f32 %v1361_v48, %v1352_v53 }
 0x64f   : > { %1367 = vst [vmem:[%s2263_s19 + $0x8] sm:$0xff] %v1363_v54 }
 0x650   : > { %1369 = vst [vmem:[%s2263_s19 + $0x18] sm:$0xff] %v1365_v56 }
 0x651   : > { %2005 = shalt.err (!%p2002_p1)
}
 0x652   : > { %s2107_s29 = smov 128   ;;  %s2108_s19 = smov 256  }
 0x653   : > { %s2109_s17 = smov 8  }
 0x654   : > { %1671 = dma.vmem_to_hbm [thread:$0]  (%p2227_p12), %s1385_s27, 512, %s1387_s16, %s1371_s20, %s2107_s29, %s2108_s19, %s2109_s17  }
 0x655 PF: > { %p1682_p4 = scmp.ge.s32.totalorder %s2100_s7, 2  ;;  %s1401_s30 = sand.u32 1, %s2060_s21  }
 0x656   : > { %s1402_s13 = scalar_lea.sflag [#allocation8], %s1401_s30 }
 0x657   : > { %p1678_p5 = pnand %p1682_p4, %p2240_p2 }
 0x659   : > { %p1679_p6 = pneg %p1678_p5 }
 0x65b   : > { %2055 = dma.done.wait (%p1679_p6), %s1402_s13, 512  }
 0x65c   : > { %2057 = vsyncadd (%p1679_p6), %s1402_s13, 4294966784  ;;  %s22_s7 = sadd.s32 1, %s2100_s7   ;;  %s2650_s28 = sld [smem:[#allocation18_spill]] }
 0x65d   : > { %p19_p8 = scmp.ge.s32.totalorder %s22_s7, 6   ;;  %s2651_s27 = sld [smem:[#allocation17_spill]] }
 0x65e   : > { %s2652_s14 = sld [smem:[#allocation12_spill]]  ;;  %s2656_s21 = smov %s2064_s22 }
 0x65f   : > { %s2653_s16 = sld [smem:[#allocation13_spill]]  ;;  %s2657_s22 = smov %s2068_s23 }
 0x660   : > { %s2654_s29 = sld [smem:[#allocation14_spill]]  ;;  %s2659_s24 = smov %s2076_s25 }
 0x661   : > { %s2655_s30 = sld [smem:[#allocation15_spill]]  ;;  %s2660_s25 = smov %s2080_s26 }
 0x662   : > { %s2658_s23 = smov %s2650_s28  ;;  %21 = sbr.rel (!%p19_p8) target bundleno = 9 (0x9), region = 95 }
 0x663   : > { %s2661_s26 = smov %s2651_s27 }
 0x664   : > { %s2662_s27 = smov %s2652_s14 }
 0x665   : > { %s2663_s28 = smov %s2653_s16 }
 0x667   :  { %1408 = vsyncpa [#allocation7], 1 }
 0x668   :  { %1410 = vsyncpa [#allocation7 + $0x1], 1 }
 0x669   :  { %1411 = vsyncpa [#allocation8], 1 }
 0x66a   :  { %1413 = vsyncpa [#allocation8 + $0x1], 1 }

</bundles_post_ra>
